<compile_context>
chip_gen: v6e
topology: v6e:2x2x1
jax: 0.10.0
libtpu: 0.0.40
codegen_flags: <defaults>
</compile_context>

<pallas_src>
import functools

import jax
import jax.numpy as jnp
from jax.experimental import pallas as pl
from jax.experimental.pallas import tpu as pltpu


def _fused_mha_kernel(n_heads, with_attn,
                      xq_ref, xk_ref, xv_ref,
                      wq_ref, wk_ref, wv_ref,
                      bq_ref, bk_ref, bv_ref,
                      wo_ref, bo_ref,
                      out_ref, *maybe_attn_ref):
    """Per-batch fused MHA: QKV projections + attention + output projection.

    Block shapes:
      xq/xk/xv : (1, S, H)  f32   (raw inputs; cast to bf16 in-kernel)
      wq/wk/wv : (n_heads, H, d)  bf16   (1/sqrt(d) folded into wq)
      bq/bk/bv : (n_heads, 1, d)  f32
      wo       : (n_heads, d, H)  bf16   (leading-axis per-head slices)
      bo       : (1, H)           f32
      out      : (1, S, H)
      attn     : (1, n_heads, S, S) bf16 (optional)
    """
    attn_ref = maybe_attn_ref[0] if with_attn else None
    S = xq_ref.shape[1]
    H = wo_ref.shape[2]

    x_q = xq_ref[0].astype(jnp.bfloat16)   # (S, H)
    x_k = xk_ref[0].astype(jnp.bfloat16)
    x_v = xv_ref[0].astype(jnp.bfloat16)

    acc = jnp.zeros((S, H), jnp.float32)
    # Static unroll over the (tiny) head count -- fine for this toy config.
    # TODO(synk): grid axis / fori_loop over heads + KV tiling for large S.
    for h in range(n_heads):
        # Per-head projections: bf16 MXU operands, f32 accumulation + bias.
        # The 1/sqrt(head_dim) scale is already folded into wq/bq.
        q = jnp.dot(x_q, wq_ref[h],
                    preferred_element_type=jnp.float32) + bq_ref[h]   # (S, d)
        k = jnp.dot(x_k, wk_ref[h],
                    preferred_element_type=jnp.float32) + bk_ref[h]   # (S, d)
        v = jnp.dot(x_v, wv_ref[h],
                    preferred_element_type=jnp.float32) + bv_ref[h]   # (S, d)

        # energy = (Q/sqrt(d)) @ K^T   (bf16 operands, f32 accumulation)
        energy = jnp.einsum('qd,kd->qk',
                            q.astype(jnp.bfloat16), k.astype(jnp.bfloat16),
                            preferred_element_type=jnp.float32)       # (S, S)

        # Numerically stable softmax, all in f32.
        m = jnp.max(energy, axis=-1, keepdims=True)
        e = jnp.exp(energy - m)
        denom = jnp.sum(e, axis=-1, keepdims=True)
        if with_attn:
            # Exact normalization for the returned probabilities (rows sum to 1);
            # stored in bf16 to halve the dominant HBM writeback.
            p = e / denom
            attn_ref[0, h] = p.astype(attn_ref.dtype)
        else:
            # Hot path: approx reciprocal rides the EUP slot for free.
            p = e * pl.reciprocal(denom, approx=True)

        # context and per-head slice of the output projection:
        #   out = sum_h ctx_h @ Wo[h]   (leading-axis weight slice, no relayout)
        ctx = jnp.dot(p.astype(jnp.bfloat16), v.astype(jnp.bfloat16),
                      preferred_element_type=jnp.float32)             # (S, d)
        acc = acc + jnp.dot(ctx.astype(jnp.bfloat16), wo_ref[h],
                            preferred_element_type=jnp.float32)       # (S, H)

    out_ref[0] = (acc + bo_ref[...]).astype(out_ref.dtype)


def _prep_params(params, n_heads, head_dim):
    """Host-side, one-time weight layout prep (head-major, bf16, scale folded)."""
    H = n_heads * head_dim
    scale = float(head_dim) ** 0.5

    def heads_in_out(w):   # (H, H) -> (n_heads, H, d): heads_in_out(W)[h] = W[:, h*d:(h+1)*d]
        return w.reshape(H, n_heads, head_dim).transpose(1, 0, 2)

    wq = heads_in_out(params['wq'] / scale).astype(jnp.bfloat16)
    wk = heads_in_out(params['wk']).astype(jnp.bfloat16)
    wv = heads_in_out(params['wv']).astype(jnp.bfloat16)
    bq = (params['bq'] / scale).reshape(n_heads, 1, head_dim).astype(jnp.float32)
    bk = params['bk'].reshape(n_heads, 1, head_dim).astype(jnp.float32)
    bv = params['bv'].reshape(n_heads, 1, head_dim).astype(jnp.float32)
    wo = params['wo'].reshape(n_heads, head_dim, H).astype(jnp.bfloat16)
    bo = params['bo'].reshape(1, H).astype(jnp.float32)
    return wq, wk, wv, bq, bk, bv, wo, bo


def multihead_attention(query, key, value, params, n_heads, *,
                        return_attention=False,
                        attn_dtype=jnp.bfloat16):
    """query/key/value: (B, S, H) f32. params: dict of W*/b* arrays (W as (in, out)).

    Returns (x, attention) matching the PyTorch MultiHeadAttentionLayer forward
    with mask=None and eval-mode dropout.  attention is (B, n_heads, S, S) in
    `attn_dtype` when return_attention=True, else None (hot path: its writeback
    is the dominant HBM cost at realistic S).
    """
    B, S, H = query.shape
    assert H % n_heads == 0
    head_dim = H // n_heads

    wq, wk, wv, bq, bk, bv, wo, bo = _prep_params(params, n_heads, head_dim)

    kernel = functools.partial(_fused_mha_kernel, n_heads, return_attention)

    x_spec = pl.BlockSpec((1, S, H), lambda b: (b, 0, 0))
    w_spec = pl.BlockSpec((n_heads, H, head_dim), lambda b: (0, 0, 0))
    b_spec = pl.BlockSpec((n_heads, 1, head_dim), lambda b: (0, 0, 0))
    wo_spec = pl.BlockSpec((n_heads, head_dim, H), lambda b: (0, 0, 0))
    bo_spec = pl.BlockSpec((1, H), lambda b: (0, 0))
    out_spec = pl.BlockSpec((1, S, H), lambda b: (b, 0, 0))

    if return_attention:
        out_shape = (
            jax.ShapeDtypeStruct((B, S, H), query.dtype),
            jax.ShapeDtypeStruct((B, n_heads, S, S), attn_dtype),
        )
        out_specs = [out_spec,
                     pl.BlockSpec((1, n_heads, S, S), lambda b: (b, 0, 0, 0))]
    else:
        out_shape = jax.ShapeDtypeStruct((B, S, H), query.dtype)
        out_specs = out_spec

    result = pl.pallas_call(
        kernel,
        out_shape=out_shape,
        grid_spec=pltpu.PrefetchScalarGridSpec(
            num_scalar_prefetch=0,
            grid=(B,),   # batch axis; "parallel" -> both v7x TCs busy for B>=2
            in_specs=[x_spec, x_spec, x_spec,
                      w_spec, w_spec, w_spec,
                      b_spec, b_spec, b_spec,
                      wo_spec, bo_spec],
            out_specs=out_specs,
        ),
        compiler_params=pltpu.CompilerParams(
            dimension_semantics=("parallel",),
            # Explicit VMEM budget (tiny blocks here).  For production S: raise
            # on v5e/v6e; on v7x (64 MiB physical) tile heads/KV instead.
            vmem_limit_bytes=32 * 1024 * 1024,
        ),
    )(query, key, value, wq, wk, wv, bq, bk, bv, wo, bo)

    if return_attention:
        out, attn = result
        return out, attn
    return result, None


def _reference(query, key, value, params, n_heads):
    """Pure-JAX f32 reference mirroring the PyTorch forward (mask=None, eval)."""
    B, S, H = query.shape
    head_dim = H // n_heads
    scale = float(head_dim) ** 0.5

    def lin(x, w, b):
        return x @ w + b

    Q = lin(query, params['wq'], params['bq'])
    K = lin(key, params['wk'], params['bk'])
    V = lin(value, params['wv'], params['bv'])

    Q = Q.reshape(B, S, n_heads, head_dim).transpose(0, 2, 1, 3)
    K = K.reshape(B, S, n_heads, head_dim).transpose(0, 2, 1, 3)
    V = V.reshape(B, S, n_heads, head_dim).transpose(0, 2, 1, 3)

    energy = jnp.einsum('bhqd,bhkd->bhqk', Q, K) / scale
    attention = jax.nn.softmax(energy, axis=-1)
    x = jnp.einsum('bhqk,bhkd->bhqd', attention, V)
    x = x.transpose(0, 2, 1, 3).reshape(B, S, H)
    x = lin(x, params['wo'], params['bo'])
    return x, attention


if __name__ == "__main__":
    B, S, H, n_heads = 2, 8, 32, 4

    key0 = jax.random.PRNGKey(0)
    keys = jax.random.split(key0, 11)

    # Deterministic synthetic parameters (W stored as (in, out)), f32.
    params = {
        'wq': jax.random.normal(keys[0], (H, H), jnp.float32) * 0.1,
        'bq': jax.random.normal(keys[1], (H,), jnp.float32) * 0.1,
        'wk': jax.random.normal(keys[2], (H, H), jnp.float32) * 0.1,
        'bk': jax.random.normal(keys[3], (H,), jnp.float32) * 0.1,
        'wv': jax.random.normal(keys[4], (H, H), jnp.float32) * 0.1,
        'bv': jax.random.normal(keys[5], (H,), jnp.float32) * 0.1,
        'wo': jax.random.normal(keys[6], (H, H), jnp.float32) * 0.1,
        'bo': jax.random.normal(keys[7], (H,), jnp.float32) * 0.1,
    }

    query = jax.random.normal(keys[8], (B, S, H), jnp.float32)
    key_in = jax.random.normal(keys[9], (B, S, H), jnp.float32)
    value = jax.random.normal(keys[10], (B, S, H), jnp.float32)

    # Path 1: with attention probabilities (exact softmax normalization, bf16 store).
    out, attn = multihead_attention(query, key_in, value, params, n_heads,
                                    return_attention=True)
    out = jax.block_until_ready(out)
    attn = jax.block_until_ready(attn)

    # Path 2: hot path (no attention writeback, approx reciprocal on EUP).
    out_fast, _ = multihead_attention(query, key_in, value, params, n_heads,
                                      return_attention=False)
    out_fast = jax.block_until_ready(out_fast)

    ref_out, ref_attn = _reference(query, key_in, value, params, n_heads)

    assert out.shape == (B, S, H)
    assert out_fast.shape == (B, S, H)
    assert attn.shape == (B, n_heads, S, S)

    # Intentional precision contract: bf16 MXU operands (f32 accumulation,
    # f32 softmax), bf16 attention storage, approx reciprocal on the hot path.
    attn_f32 = attn.astype(jnp.float32)
    assert jnp.allclose(out, ref_out, atol=3e-2, rtol=3e-2), \
        f"max |out - ref| = {jnp.max(jnp.abs(out - ref_out))}"
    assert jnp.allclose(out_fast, ref_out, atol=3e-2, rtol=3e-2), \
        f"max |out_fast - ref| = {jnp.max(jnp.abs(out_fast - ref_out))}"
    assert jnp.allclose(attn_f32, ref_attn, atol=3e-2, rtol=3e-2), \
        f"max |attn - ref| = {jnp.max(jnp.abs(attn_f32 - ref_attn))}"
    # Returned softmax rows use the exact reciprocal: sums ~1 within bf16 rounding.
    assert jnp.allclose(jnp.sum(attn_f32, axis=-1), 1.0, atol=5e-3)

    print("KERNEL_OK")
</pallas_src>

<mosaic_0001>
module attributes {stable_mosaic.version = 11 : i64} {
  func.func @_fused_mha_kernel(%arg0: i32, %arg1: memref<1x8x32xf32, #tpu.memory_space<vmem>>, %arg2: memref<1x8x32xf32, #tpu.memory_space<vmem>>, %arg3: memref<1x8x32xf32, #tpu.memory_space<vmem>>, %arg4: memref<4x32x8xbf16, #tpu.memory_space<vmem>>, %arg5: memref<4x32x8xbf16, #tpu.memory_space<vmem>>, %arg6: memref<4x32x8xbf16, #tpu.memory_space<vmem>>, %arg7: memref<4x1x8xf32, #tpu.memory_space<vmem>>, %arg8: memref<4x1x8xf32, #tpu.memory_space<vmem>>, %arg9: memref<4x1x8xf32, #tpu.memory_space<vmem>>, %arg10: memref<4x8x32xbf16, #tpu.memory_space<vmem>>, %arg11: memref<1x32xf32, #tpu.memory_space<vmem>>, %arg12: memref<1x8x32xf32, #tpu.memory_space<vmem>>, %arg13: memref<1x4x8x8xbf16, #tpu.memory_space<vmem>>) attributes {dimension_semantics = [#tpu.dimension_semantics<parallel>], iteration_bounds = array<i64: 2>, scalar_prefetch = 0 : i64, scratch_operands = 0 : i64, tpu.core_type = #tpu.core_type<tc>, window_params = [{transform_indices = @transform_0, window_bounds = array<i64: 1, 8, 32>}, {transform_indices = @transform_1, window_bounds = array<i64: 1, 8, 32>}, {transform_indices = @transform_2, window_bounds = array<i64: 1, 8, 32>}, {pipeline_mode = #tpu.pipeline_mode<synchronous>, transform_indices = @transform_3, window_bounds = array<i64: 4, 32, 8>}, {pipeline_mode = #tpu.pipeline_mode<synchronous>, transform_indices = @transform_4, window_bounds = array<i64: 4, 32, 8>}, {pipeline_mode = #tpu.pipeline_mode<synchronous>, transform_indices = @transform_5, window_bounds = array<i64: 4, 32, 8>}, {pipeline_mode = #tpu.pipeline_mode<synchronous>, transform_indices = @transform_6, window_bounds = array<i64: 4, 1, 8>}, {pipeline_mode = #tpu.pipeline_mode<synchronous>, transform_indices = @transform_7, window_bounds = array<i64: 4, 1, 8>}, {pipeline_mode = #tpu.pipeline_mode<synchronous>, transform_indices = @transform_8, window_bounds = array<i64: 4, 1, 8>}, {pipeline_mode = #tpu.pipeline_mode<synchronous>, transform_indices = @transform_9, window_bounds = array<i64: 4, 8, 32>}, {pipeline_mode = #tpu.pipeline_mode<synchronous>, transform_indices = @transform_10, window_bounds = array<i64: 1, 32>}, {transform_indices = @transform_11, window_bounds = array<i64: 1, 8, 32>}, {transform_indices = @transform_12, window_bounds = array<i64: 1, 4, 8, 8>}]} {
    %c0 = arith.constant 0 : index
    %c0_0 = arith.constant 0 : index
    %c0_1 = arith.constant 0 : index
    %0 = vector.load %arg1[%c0, %c0_0, %c0_1] : memref<1x8x32xf32, #tpu.memory_space<vmem>>, vector<1x8x32xf32>
    %1 = vector.shape_cast %0 : vector<1x8x32xf32> to vector<8x32xf32>
    %2 = arith.truncf %1 : vector<8x32xf32> to vector<8x32xbf16>
    %c0_2 = arith.constant 0 : index
    %c0_3 = arith.constant 0 : index
    %c0_4 = arith.constant 0 : index
    %3 = vector.load %arg2[%c0_2, %c0_3, %c0_4] : memref<1x8x32xf32, #tpu.memory_space<vmem>>, vector<1x8x32xf32>
    %4 = vector.shape_cast %3 : vector<1x8x32xf32> to vector<8x32xf32>
    %5 = arith.truncf %4 : vector<8x32xf32> to vector<8x32xbf16>
    %c0_5 = arith.constant 0 : index
    %c0_6 = arith.constant 0 : index
    %c0_7 = arith.constant 0 : index
    %6 = vector.load %arg3[%c0_5, %c0_6, %c0_7] : memref<1x8x32xf32, #tpu.memory_space<vmem>>, vector<1x8x32xf32>
    %7 = vector.shape_cast %6 : vector<1x8x32xf32> to vector<8x32xf32>
    %8 = arith.truncf %7 : vector<8x32xf32> to vector<8x32xbf16>
    %cst = arith.constant 0.000000e+00 : f32
    %9 = vector.broadcast %cst : f32 to vector<8x32xf32>
    %c0_8 = arith.constant 0 : index
    %c0_9 = arith.constant 0 : index
    %c0_10 = arith.constant 0 : index
    %10 = vector.load %arg4[%c0_8, %c0_9, %c0_10] : memref<4x32x8xbf16, #tpu.memory_space<vmem>>, vector<1x32x8xbf16>
    %11 = vector.shape_cast %10 : vector<1x32x8xbf16> to vector<32x8xbf16>
    %cst_11 = arith.constant dense<0.000000e+00> : vector<8x8xf32>
    %12 = tpu.matmul %2, %11, %cst_11 {dimension_numbers = #tpu.dot_dimension_numbers<[1], [0], [0], [1], [0, 0, 1, 1], [], []>} : vector<8x32xbf16>, vector<32x8xbf16>, vector<8x8xf32> -> vector<8x8xf32>
    %c0_12 = arith.constant 0 : index
    %c0_13 = arith.constant 0 : index
    %c0_14 = arith.constant 0 : index
    %13 = vector.load %arg7[%c0_12, %c0_13, %c0_14] : memref<4x1x8xf32, #tpu.memory_space<vmem>>, vector<1x1x8xf32>
    %14 = vector.shape_cast %13 : vector<1x1x8xf32> to vector<1x8xf32>
    %15 = vector.broadcast %14 : vector<1x8xf32> to vector<8x8xf32>
    %16 = arith.addf %12, %15 : vector<8x8xf32>
    %c0_15 = arith.constant 0 : index
    %c0_16 = arith.constant 0 : index
    %c0_17 = arith.constant 0 : index
    %17 = vector.load %arg5[%c0_15, %c0_16, %c0_17] : memref<4x32x8xbf16, #tpu.memory_space<vmem>>, vector<1x32x8xbf16>
    %18 = vector.shape_cast %17 : vector<1x32x8xbf16> to vector<32x8xbf16>
    %cst_18 = arith.constant dense<0.000000e+00> : vector<8x8xf32>
    %19 = tpu.matmul %5, %18, %cst_18 {dimension_numbers = #tpu.dot_dimension_numbers<[1], [0], [0], [1], [0, 0, 1, 1], [], []>} : vector<8x32xbf16>, vector<32x8xbf16>, vector<8x8xf32> -> vector<8x8xf32>
    %c0_19 = arith.constant 0 : index
    %c0_20 = arith.constant 0 : index
    %c0_21 = arith.constant 0 : index
    %20 = vector.load %arg8[%c0_19, %c0_20, %c0_21] : memref<4x1x8xf32, #tpu.memory_space<vmem>>, vector<1x1x8xf32>
    %21 = vector.shape_cast %20 : vector<1x1x8xf32> to vector<1x8xf32>
    %22 = vector.broadcast %21 : vector<1x8xf32> to vector<8x8xf32>
    %23 = arith.addf %19, %22 : vector<8x8xf32>
    %c0_22 = arith.constant 0 : index
    %c0_23 = arith.constant 0 : index
    %c0_24 = arith.constant 0 : index
    %24 = vector.load %arg6[%c0_22, %c0_23, %c0_24] : memref<4x32x8xbf16, #tpu.memory_space<vmem>>, vector<1x32x8xbf16>
    %25 = vector.shape_cast %24 : vector<1x32x8xbf16> to vector<32x8xbf16>
    %cst_25 = arith.constant dense<0.000000e+00> : vector<8x8xf32>
    %26 = tpu.matmul %8, %25, %cst_25 {dimension_numbers = #tpu.dot_dimension_numbers<[1], [0], [0], [1], [0, 0, 1, 1], [], []>} : vector<8x32xbf16>, vector<32x8xbf16>, vector<8x8xf32> -> vector<8x8xf32>
    %c0_26 = arith.constant 0 : index
    %c0_27 = arith.constant 0 : index
    %c0_28 = arith.constant 0 : index
    %27 = vector.load %arg9[%c0_26, %c0_27, %c0_28] : memref<4x1x8xf32, #tpu.memory_space<vmem>>, vector<1x1x8xf32>
    %28 = vector.shape_cast %27 : vector<1x1x8xf32> to vector<1x8xf32>
    %29 = vector.broadcast %28 : vector<1x8xf32> to vector<8x8xf32>
    %30 = arith.addf %26, %29 : vector<8x8xf32>
    %31 = arith.truncf %16 : vector<8x8xf32> to vector<8x8xbf16>
    %32 = arith.truncf %23 : vector<8x8xf32> to vector<8x8xbf16>
    "tpu.trace_start"() <{level = 10 : i32, message = "qd,kd->qk"}> : () -> ()
    %cst_29 = arith.constant dense<0.000000e+00> : vector<8x8xf32>
    %33 = tpu.matmul %31, %32, %cst_29 {dimension_numbers = #tpu.dot_dimension_numbers<[1], [1], [0], [0], [0, 0, 1, 0], [], []>} : vector<8x8xbf16>, vector<8x8xbf16>, vector<8x8xf32> -> vector<8x8xf32>
    "tpu.trace_stop"() : () -> ()
    %cst_30 = arith.constant dense<0xFF800000> : vector<8xf32>
    %34 = vector.multi_reduction <maximumf>, %33, %cst_30 [1] : vector<8x8xf32> to vector<8xf32>
    %35 = vector.shape_cast %34 : vector<8xf32> to vector<8x1xf32>
    %36 = vector.broadcast %35 : vector<8x1xf32> to vector<8x8xf32>
    %37 = arith.subf %33, %36 : vector<8x8xf32>
    %38 = math.exp %37 : vector<8x8xf32>
    %cst_31 = arith.constant dense<0.000000e+00> : vector<8xf32>
    %39 = vector.multi_reduction <add>, %38, %cst_31 [1] : vector<8x8xf32> to vector<8xf32>
    %40 = vector.shape_cast %39 : vector<8xf32> to vector<8x1xf32>
    %41 = vector.broadcast %40 : vector<8x1xf32> to vector<8x8xf32>
    %42 = arith.divf %38, %41 : vector<8x8xf32>
    %43 = arith.truncf %42 : vector<8x8xf32> to vector<8x8xbf16>
    %c0_32 = arith.constant 0 : index
    %c0_33 = arith.constant 0 : index
    %c0_34 = arith.constant 0 : index
    %c0_35 = arith.constant 0 : index
    %44 = vector.load %arg13[%c0_32, %c0_33, %c0_34, %c0_35] : memref<1x4x8x8xbf16, #tpu.memory_space<vmem>>, vector<1x1x8x8xbf16>
    %45 = vector.shape_cast %44 : vector<1x1x8x8xbf16> to vector<8x8xbf16>
    %46 = vector.shape_cast %43 : vector<8x8xbf16> to vector<1x1x8x8xbf16>
    tpu.vector_store %arg13[%c0_32, %c0_33, %c0_34, %c0_35], %46 {strides = array<i32>} : memref<1x4x8x8xbf16, #tpu.memory_space<vmem>>, vector<1x1x8x8xbf16>,
    %47 = arith.truncf %42 : vector<8x8xf32> to vector<8x8xbf16>
    %48 = arith.truncf %30 : vector<8x8xf32> to vector<8x8xbf16>
    %cst_36 = arith.constant dense<0.000000e+00> : vector<8x8xf32>
    %49 = tpu.matmul %47, %48, %cst_36 {dimension_numbers = #tpu.dot_dimension_numbers<[1], [0], [0], [1], [0, 0, 1, 1], [], []>} : vector<8x8xbf16>, vector<8x8xbf16>, vector<8x8xf32> -> vector<8x8xf32>
    %50 = arith.truncf %49 : vector<8x8xf32> to vector<8x8xbf16>
    %c0_37 = arith.constant 0 : index
    %c0_38 = arith.constant 0 : index
    %c0_39 = arith.constant 0 : index
    %51 = vector.load %arg10[%c0_37, %c0_38, %c0_39] : memref<4x8x32xbf16, #tpu.memory_space<vmem>>, vector<1x8x32xbf16>
    %52 = vector.shape_cast %51 : vector<1x8x32xbf16> to vector<8x32xbf16>
    %cst_40 = arith.constant dense<0.000000e+00> : vector<8x32xf32>
    %53 = tpu.matmul %50, %52, %cst_40 {dimension_numbers = #tpu.dot_dimension_numbers<[1], [0], [0], [1], [0, 0, 1, 1], [], []>} : vector<8x8xbf16>, vector<8x32xbf16>, vector<8x32xf32> -> vector<8x32xf32>
    %54 = arith.addf %9, %53 : vector<8x32xf32>
    %c1 = arith.constant 1 : index
    %c0_41 = arith.constant 0 : index
    %c0_42 = arith.constant 0 : index
    %55 = vector.load %arg4[%c1, %c0_41, %c0_42] : memref<4x32x8xbf16, #tpu.memory_space<vmem>>, vector<1x32x8xbf16>
    %56 = vector.shape_cast %55 : vector<1x32x8xbf16> to vector<32x8xbf16>
    %cst_43 = arith.constant dense<0.000000e+00> : vector<8x8xf32>
    %57 = tpu.matmul %2, %56, %cst_43 {dimension_numbers = #tpu.dot_dimension_numbers<[1], [0], [0], [1], [0, 0, 1, 1], [], []>} : vector<8x32xbf16>, vector<32x8xbf16>, vector<8x8xf32> -> vector<8x8xf32>
    %c1_44 = arith.constant 1 : index
    %c0_45 = arith.constant 0 : index
    %c0_46 = arith.constant 0 : index
    %58 = vector.load %arg7[%c1_44, %c0_45, %c0_46] : memref<4x1x8xf32, #tpu.memory_space<vmem>>, vector<1x1x8xf32>
    %59 = vector.shape_cast %58 : vector<1x1x8xf32> to vector<1x8xf32>
    %60 = vector.broadcast %59 : vector<1x8xf32> to vector<8x8xf32>
    %61 = arith.addf %57, %60 : vector<8x8xf32>
    %c1_47 = arith.constant 1 : index
    %c0_48 = arith.constant 0 : index
    %c0_49 = arith.constant 0 : index
    %62 = vector.load %arg5[%c1_47, %c0_48, %c0_49] : memref<4x32x8xbf16, #tpu.memory_space<vmem>>, vector<1x32x8xbf16>
    %63 = vector.shape_cast %62 : vector<1x32x8xbf16> to vector<32x8xbf16>
    %cst_50 = arith.constant dense<0.000000e+00> : vector<8x8xf32>
    %64 = tpu.matmul %5, %63, %cst_50 {dimension_numbers = #tpu.dot_dimension_numbers<[1], [0], [0], [1], [0, 0, 1, 1], [], []>} : vector<8x32xbf16>, vector<32x8xbf16>, vector<8x8xf32> -> vector<8x8xf32>
    %c1_51 = arith.constant 1 : index
    %c0_52 = arith.constant 0 : index
    %c0_53 = arith.constant 0 : index
    %65 = vector.load %arg8[%c1_51, %c0_52, %c0_53] : memref<4x1x8xf32, #tpu.memory_space<vmem>>, vector<1x1x8xf32>
    %66 = vector.shape_cast %65 : vector<1x1x8xf32> to vector<1x8xf32>
    %67 = vector.broadcast %66 : vector<1x8xf32> to vector<8x8xf32>
    %68 = arith.addf %64, %67 : vector<8x8xf32>
    %c1_54 = arith.constant 1 : index
    %c0_55 = arith.constant 0 : index
    %c0_56 = arith.constant 0 : index
    %69 = vector.load %arg6[%c1_54, %c0_55, %c0_56] : memref<4x32x8xbf16, #tpu.memory_space<vmem>>, vector<1x32x8xbf16>
    %70 = vector.shape_cast %69 : vector<1x32x8xbf16> to vector<32x8xbf16>
    %cst_57 = arith.constant dense<0.000000e+00> : vector<8x8xf32>
    %71 = tpu.matmul %8, %70, %cst_57 {dimension_numbers = #tpu.dot_dimension_numbers<[1], [0], [0], [1], [0, 0, 1, 1], [], []>} : vector<8x32xbf16>, vector<32x8xbf16>, vector<8x8xf32> -> vector<8x8xf32>
    %c1_58 = arith.constant 1 : index
    %c0_59 = arith.constant 0 : index
    %c0_60 = arith.constant 0 : index
    %72 = vector.load %arg9[%c1_58, %c0_59, %c0_60] : memref<4x1x8xf32, #tpu.memory_space<vmem>>, vector<1x1x8xf32>
    %73 = vector.shape_cast %72 : vector<1x1x8xf32> to vector<1x8xf32>
    %74 = vector.broadcast %73 : vector<1x8xf32> to vector<8x8xf32>
    %75 = arith.addf %71, %74 : vector<8x8xf32>
    %76 = arith.truncf %61 : vector<8x8xf32> to vector<8x8xbf16>
    %77 = arith.truncf %68 : vector<8x8xf32> to vector<8x8xbf16>
    "tpu.trace_start"() <{level = 10 : i32, message = "qd,kd->qk"}> : () -> ()
    %cst_61 = arith.constant dense<0.000000e+00> : vector<8x8xf32>
    %78 = tpu.matmul %76, %77, %cst_61 {dimension_numbers = #tpu.dot_dimension_numbers<[1], [1], [0], [0], [0, 0, 1, 0], [], []>} : vector<8x8xbf16>, vector<8x8xbf16>, vector<8x8xf32> -> vector<8x8xf32>
    "tpu.trace_stop"() : () -> ()
    %cst_62 = arith.constant dense<0xFF800000> : vector<8xf32>
    %79 = vector.multi_reduction <maximumf>, %78, %cst_62 [1] : vector<8x8xf32> to vector<8xf32>
    %80 = vector.shape_cast %79 : vector<8xf32> to vector<8x1xf32>
    %81 = vector.broadcast %80 : vector<8x1xf32> to vector<8x8xf32>
    %82 = arith.subf %78, %81 : vector<8x8xf32>
    %83 = math.exp %82 : vector<8x8xf32>
    %cst_63 = arith.constant dense<0.000000e+00> : vector<8xf32>
    %84 = vector.multi_reduction <add>, %83, %cst_63 [1] : vector<8x8xf32> to vector<8xf32>
    %85 = vector.shape_cast %84 : vector<8xf32> to vector<8x1xf32>
    %86 = vector.broadcast %85 : vector<8x1xf32> to vector<8x8xf32>
    %87 = arith.divf %83, %86 : vector<8x8xf32>
    %88 = arith.truncf %87 : vector<8x8xf32> to vector<8x8xbf16>
    %c0_64 = arith.constant 0 : index
    %c1_65 = arith.constant 1 : index
    %c0_66 = arith.constant 0 : index
    %c0_67 = arith.constant 0 : index
    %89 = vector.load %arg13[%c0_64, %c1_65, %c0_66, %c0_67] : memref<1x4x8x8xbf16, #tpu.memory_space<vmem>>, vector<1x1x8x8xbf16>
    %90 = vector.shape_cast %89 : vector<1x1x8x8xbf16> to vector<8x8xbf16>
    %91 = vector.shape_cast %88 : vector<8x8xbf16> to vector<1x1x8x8xbf16>
    tpu.vector_store %arg13[%c0_64, %c1_65, %c0_66, %c0_67], %91 {strides = array<i32>} : memref<1x4x8x8xbf16, #tpu.memory_space<vmem>>, vector<1x1x8x8xbf16>,
    %92 = arith.truncf %87 : vector<8x8xf32> to vector<8x8xbf16>
    %93 = arith.truncf %75 : vector<8x8xf32> to vector<8x8xbf16>
    %cst_68 = arith.constant dense<0.000000e+00> : vector<8x8xf32>
    %94 = tpu.matmul %92, %93, %cst_68 {dimension_numbers = #tpu.dot_dimension_numbers<[1], [0], [0], [1], [0, 0, 1, 1], [], []>} : vector<8x8xbf16>, vector<8x8xbf16>, vector<8x8xf32> -> vector<8x8xf32>
    %95 = arith.truncf %94 : vector<8x8xf32> to vector<8x8xbf16>
    %c1_69 = arith.constant 1 : index
    %c0_70 = arith.constant 0 : index
    %c0_71 = arith.constant 0 : index
    %96 = vector.load %arg10[%c1_69, %c0_70, %c0_71] : memref<4x8x32xbf16, #tpu.memory_space<vmem>>, vector<1x8x32xbf16>
    %97 = vector.shape_cast %96 : vector<1x8x32xbf16> to vector<8x32xbf16>
    %cst_72 = arith.constant dense<0.000000e+00> : vector<8x32xf32>
    %98 = tpu.matmul %95, %97, %cst_72 {dimension_numbers = #tpu.dot_dimension_numbers<[1], [0], [0], [1], [0, 0, 1, 1], [], []>} : vector<8x8xbf16>, vector<8x32xbf16>, vector<8x32xf32> -> vector<8x32xf32>
    %99 = arith.addf %54, %98 : vector<8x32xf32>
    %c2 = arith.constant 2 : index
    %c0_73 = arith.constant 0 : index
    %c0_74 = arith.constant 0 : index
    %100 = vector.load %arg4[%c2, %c0_73, %c0_74] : memref<4x32x8xbf16, #tpu.memory_space<vmem>>, vector<1x32x8xbf16>
    %101 = vector.shape_cast %100 : vector<1x32x8xbf16> to vector<32x8xbf16>
    %cst_75 = arith.constant dense<0.000000e+00> : vector<8x8xf32>
    %102 = tpu.matmul %2, %101, %cst_75 {dimension_numbers = #tpu.dot_dimension_numbers<[1], [0], [0], [1], [0, 0, 1, 1], [], []>} : vector<8x32xbf16>, vector<32x8xbf16>, vector<8x8xf32> -> vector<8x8xf32>
    %c2_76 = arith.constant 2 : index
    %c0_77 = arith.constant 0 : index
    %c0_78 = arith.constant 0 : index
    %103 = vector.load %arg7[%c2_76, %c0_77, %c0_78] : memref<4x1x8xf32, #tpu.memory_space<vmem>>, vector<1x1x8xf32>
    %104 = vector.shape_cast %103 : vector<1x1x8xf32> to vector<1x8xf32>
    %105 = vector.broadcast %104 : vector<1x8xf32> to vector<8x8xf32>
    %106 = arith.addf %102, %105 : vector<8x8xf32>
    %c2_79 = arith.constant 2 : index
    %c0_80 = arith.constant 0 : index
    %c0_81 = arith.constant 0 : index
    %107 = vector.load %arg5[%c2_79, %c0_80, %c0_81] : memref<4x32x8xbf16, #tpu.memory_space<vmem>>, vector<1x32x8xbf16>
    %108 = vector.shape_cast %107 : vector<1x32x8xbf16> to vector<32x8xbf16>
    %cst_82 = arith.constant dense<0.000000e+00> : vector<8x8xf32>
    %109 = tpu.matmul %5, %108, %cst_82 {dimension_numbers = #tpu.dot_dimension_numbers<[1], [0], [0], [1], [0, 0, 1, 1], [], []>} : vector<8x32xbf16>, vector<32x8xbf16>, vector<8x8xf32> -> vector<8x8xf32>
    %c2_83 = arith.constant 2 : index
    %c0_84 = arith.constant 0 : index
    %c0_85 = arith.constant 0 : index
    %110 = vector.load %arg8[%c2_83, %c0_84, %c0_85] : memref<4x1x8xf32, #tpu.memory_space<vmem>>, vector<1x1x8xf32>
    %111 = vector.shape_cast %110 : vector<1x1x8xf32> to vector<1x8xf32>
    %112 = vector.broadcast %111 : vector<1x8xf32> to vector<8x8xf32>
    %113 = arith.addf %109, %112 : vector<8x8xf32>
    %c2_86 = arith.constant 2 : index
    %c0_87 = arith.constant 0 : index
    %c0_88 = arith.constant 0 : index
    %114 = vector.load %arg6[%c2_86, %c0_87, %c0_88] : memref<4x32x8xbf16, #tpu.memory_space<vmem>>, vector<1x32x8xbf16>
    %115 = vector.shape_cast %114 : vector<1x32x8xbf16> to vector<32x8xbf16>
    %cst_89 = arith.constant dense<0.000000e+00> : vector<8x8xf32>
    %116 = tpu.matmul %8, %115, %cst_89 {dimension_numbers = #tpu.dot_dimension_numbers<[1], [0], [0], [1], [0, 0, 1, 1], [], []>} : vector<8x32xbf16>, vector<32x8xbf16>, vector<8x8xf32> -> vector<8x8xf32>
    %c2_90 = arith.constant 2 : index
    %c0_91 = arith.constant 0 : index
    %c0_92 = arith.constant 0 : index
    %117 = vector.load %arg9[%c2_90, %c0_91, %c0_92] : memref<4x1x8xf32, #tpu.memory_space<vmem>>, vector<1x1x8xf32>
    %118 = vector.shape_cast %117 : vector<1x1x8xf32> to vector<1x8xf32>
    %119 = vector.broadcast %118 : vector<1x8xf32> to vector<8x8xf32>
    %120 = arith.addf %116, %119 : vector<8x8xf32>
    %121 = arith.truncf %106 : vector<8x8xf32> to vector<8x8xbf16>
    %122 = arith.truncf %113 : vector<8x8xf32> to vector<8x8xbf16>
    "tpu.trace_start"() <{level = 10 : i32, message = "qd,kd->qk"}> : () -> ()
    %cst_93 = arith.constant dense<0.000000e+00> : vector<8x8xf32>
    %123 = tpu.matmul %121, %122, %cst_93 {dimension_numbers = #tpu.dot_dimension_numbers<[1], [1], [0], [0], [0, 0, 1, 0], [], []>} : vector<8x8xbf16>, vector<8x8xbf16>, vector<8x8xf32> -> vector<8x8xf32>
    "tpu.trace_stop"() : () -> ()
    %cst_94 = arith.constant dense<0xFF800000> : vector<8xf32>
    %124 = vector.multi_reduction <maximumf>, %123, %cst_94 [1] : vector<8x8xf32> to vector<8xf32>
    %125 = vector.shape_cast %124 : vector<8xf32> to vector<8x1xf32>
    %126 = vector.broadcast %125 : vector<8x1xf32> to vector<8x8xf32>
    %127 = arith.subf %123, %126 : vector<8x8xf32>
    %128 = math.exp %127 : vector<8x8xf32>
    %cst_95 = arith.constant dense<0.000000e+00> : vector<8xf32>
    %129 = vector.multi_reduction <add>, %128, %cst_95 [1] : vector<8x8xf32> to vector<8xf32>
    %130 = vector.shape_cast %129 : vector<8xf32> to vector<8x1xf32>
    %131 = vector.broadcast %130 : vector<8x1xf32> to vector<8x8xf32>
    %132 = arith.divf %128, %131 : vector<8x8xf32>
    %133 = arith.truncf %132 : vector<8x8xf32> to vector<8x8xbf16>
    %c0_96 = arith.constant 0 : index
    %c2_97 = arith.constant 2 : index
    %c0_98 = arith.constant 0 : index
    %c0_99 = arith.constant 0 : index
    %134 = vector.load %arg13[%c0_96, %c2_97, %c0_98, %c0_99] : memref<1x4x8x8xbf16, #tpu.memory_space<vmem>>, vector<1x1x8x8xbf16>
    %135 = vector.shape_cast %134 : vector<1x1x8x8xbf16> to vector<8x8xbf16>
    %136 = vector.shape_cast %133 : vector<8x8xbf16> to vector<1x1x8x8xbf16>
    tpu.vector_store %arg13[%c0_96, %c2_97, %c0_98, %c0_99], %136 {strides = array<i32>} : memref<1x4x8x8xbf16, #tpu.memory_space<vmem>>, vector<1x1x8x8xbf16>,
    %137 = arith.truncf %132 : vector<8x8xf32> to vector<8x8xbf16>
    %138 = arith.truncf %120 : vector<8x8xf32> to vector<8x8xbf16>
    %cst_100 = arith.constant dense<0.000000e+00> : vector<8x8xf32>
    %139 = tpu.matmul %137, %138, %cst_100 {dimension_numbers = #tpu.dot_dimension_numbers<[1], [0], [0], [1], [0, 0, 1, 1], [], []>} : vector<8x8xbf16>, vector<8x8xbf16>, vector<8x8xf32> -> vector<8x8xf32>
    %140 = arith.truncf %139 : vector<8x8xf32> to vector<8x8xbf16>
    %c2_101 = arith.constant 2 : index
    %c0_102 = arith.constant 0 : index
    %c0_103 = arith.constant 0 : index
    %141 = vector.load %arg10[%c2_101, %c0_102, %c0_103] : memref<4x8x32xbf16, #tpu.memory_space<vmem>>, vector<1x8x32xbf16>
    %142 = vector.shape_cast %141 : vector<1x8x32xbf16> to vector<8x32xbf16>
    %cst_104 = arith.constant dense<0.000000e+00> : vector<8x32xf32>
    %143 = tpu.matmul %140, %142, %cst_104 {dimension_numbers = #tpu.dot_dimension_numbers<[1], [0], [0], [1], [0, 0, 1, 1], [], []>} : vector<8x8xbf16>, vector<8x32xbf16>, vector<8x32xf32> -> vector<8x32xf32>
    %144 = arith.addf %99, %143 : vector<8x32xf32>
    %c3 = arith.constant 3 : index
    %c0_105 = arith.constant 0 : index
    %c0_106 = arith.constant 0 : index
    %145 = vector.load %arg4[%c3, %c0_105, %c0_106] : memref<4x32x8xbf16, #tpu.memory_space<vmem>>, vector<1x32x8xbf16>
    %146 = vector.shape_cast %145 : vector<1x32x8xbf16> to vector<32x8xbf16>
    %cst_107 = arith.constant dense<0.000000e+00> : vector<8x8xf32>
    %147 = tpu.matmul %2, %146, %cst_107 {dimension_numbers = #tpu.dot_dimension_numbers<[1], [0], [0], [1], [0, 0, 1, 1], [], []>} : vector<8x32xbf16>, vector<32x8xbf16>, vector<8x8xf32> -> vector<8x8xf32>
    %c3_108 = arith.constant 3 : index
    %c0_109 = arith.constant 0 : index
    %c0_110 = arith.constant 0 : index
    %148 = vector.load %arg7[%c3_108, %c0_109, %c0_110] : memref<4x1x8xf32, #tpu.memory_space<vmem>>, vector<1x1x8xf32>
    %149 = vector.shape_cast %148 : vector<1x1x8xf32> to vector<1x8xf32>
    %150 = vector.broadcast %149 : vector<1x8xf32> to vector<8x8xf32>
    %151 = arith.addf %147, %150 : vector<8x8xf32>
    %c3_111 = arith.constant 3 : index
    %c0_112 = arith.constant 0 : index
    %c0_113 = arith.constant 0 : index
    %152 = vector.load %arg5[%c3_111, %c0_112, %c0_113] : memref<4x32x8xbf16, #tpu.memory_space<vmem>>, vector<1x32x8xbf16>
    %153 = vector.shape_cast %152 : vector<1x32x8xbf16> to vector<32x8xbf16>
    %cst_114 = arith.constant dense<0.000000e+00> : vector<8x8xf32>
    %154 = tpu.matmul %5, %153, %cst_114 {dimension_numbers = #tpu.dot_dimension_numbers<[1], [0], [0], [1], [0, 0, 1, 1], [], []>} : vector<8x32xbf16>, vector<32x8xbf16>, vector<8x8xf32> -> vector<8x8xf32>
    %c3_115 = arith.constant 3 : index
    %c0_116 = arith.constant 0 : index
    %c0_117 = arith.constant 0 : index
    %155 = vector.load %arg8[%c3_115, %c0_116, %c0_117] : memref<4x1x8xf32, #tpu.memory_space<vmem>>, vector<1x1x8xf32>
    %156 = vector.shape_cast %155 : vector<1x1x8xf32> to vector<1x8xf32>
    %157 = vector.broadcast %156 : vector<1x8xf32> to vector<8x8xf32>
    %158 = arith.addf %154, %157 : vector<8x8xf32>
    %c3_118 = arith.constant 3 : index
    %c0_119 = arith.constant 0 : index
    %c0_120 = arith.constant 0 : index
    %159 = vector.load %arg6[%c3_118, %c0_119, %c0_120] : memref<4x32x8xbf16, #tpu.memory_space<vmem>>, vector<1x32x8xbf16>
    %160 = vector.shape_cast %159 : vector<1x32x8xbf16> to vector<32x8xbf16>
    %cst_121 = arith.constant dense<0.000000e+00> : vector<8x8xf32>
    %161 = tpu.matmul %8, %160, %cst_121 {dimension_numbers = #tpu.dot_dimension_numbers<[1], [0], [0], [1], [0, 0, 1, 1], [], []>} : vector<8x32xbf16>, vector<32x8xbf16>, vector<8x8xf32> -> vector<8x8xf32>
    %c3_122 = arith.constant 3 : index
    %c0_123 = arith.constant 0 : index
    %c0_124 = arith.constant 0 : index
    %162 = vector.load %arg9[%c3_122, %c0_123, %c0_124] : memref<4x1x8xf32, #tpu.memory_space<vmem>>, vector<1x1x8xf32>
    %163 = vector.shape_cast %162 : vector<1x1x8xf32> to vector<1x8xf32>
    %164 = vector.broadcast %163 : vector<1x8xf32> to vector<8x8xf32>
    %165 = arith.addf %161, %164 : vector<8x8xf32>
    %166 = arith.truncf %151 : vector<8x8xf32> to vector<8x8xbf16>
    %167 = arith.truncf %158 : vector<8x8xf32> to vector<8x8xbf16>
    "tpu.trace_start"() <{level = 10 : i32, message = "qd,kd->qk"}> : () -> ()
    %cst_125 = arith.constant dense<0.000000e+00> : vector<8x8xf32>
    %168 = tpu.matmul %166, %167, %cst_125 {dimension_numbers = #tpu.dot_dimension_numbers<[1], [1], [0], [0], [0, 0, 1, 0], [], []>} : vector<8x8xbf16>, vector<8x8xbf16>, vector<8x8xf32> -> vector<8x8xf32>
    "tpu.trace_stop"() : () -> ()
    %cst_126 = arith.constant dense<0xFF800000> : vector<8xf32>
    %169 = vector.multi_reduction <maximumf>, %168, %cst_126 [1] : vector<8x8xf32> to vector<8xf32>
    %170 = vector.shape_cast %169 : vector<8xf32> to vector<8x1xf32>
    %171 = vector.broadcast %170 : vector<8x1xf32> to vector<8x8xf32>
    %172 = arith.subf %168, %171 : vector<8x8xf32>
    %173 = math.exp %172 : vector<8x8xf32>
    %cst_127 = arith.constant dense<0.000000e+00> : vector<8xf32>
    %174 = vector.multi_reduction <add>, %173, %cst_127 [1] : vector<8x8xf32> to vector<8xf32>
    %175 = vector.shape_cast %174 : vector<8xf32> to vector<8x1xf32>
    %176 = vector.broadcast %175 : vector<8x1xf32> to vector<8x8xf32>
    %177 = arith.divf %173, %176 : vector<8x8xf32>
    %178 = arith.truncf %177 : vector<8x8xf32> to vector<8x8xbf16>
    %c0_128 = arith.constant 0 : index
    %c3_129 = arith.constant 3 : index
    %c0_130 = arith.constant 0 : index
    %c0_131 = arith.constant 0 : index
    %179 = vector.load %arg13[%c0_128, %c3_129, %c0_130, %c0_131] : memref<1x4x8x8xbf16, #tpu.memory_space<vmem>>, vector<1x1x8x8xbf16>
    %180 = vector.shape_cast %179 : vector<1x1x8x8xbf16> to vector<8x8xbf16>
    %181 = vector.shape_cast %178 : vector<8x8xbf16> to vector<1x1x8x8xbf16>
    tpu.vector_store %arg13[%c0_128, %c3_129, %c0_130, %c0_131], %181 {strides = array<i32>} : memref<1x4x8x8xbf16, #tpu.memory_space<vmem>>, vector<1x1x8x8xbf16>,
    %182 = arith.truncf %177 : vector<8x8xf32> to vector<8x8xbf16>
    %183 = arith.truncf %165 : vector<8x8xf32> to vector<8x8xbf16>
    %cst_132 = arith.constant dense<0.000000e+00> : vector<8x8xf32>
    %184 = tpu.matmul %182, %183, %cst_132 {dimension_numbers = #tpu.dot_dimension_numbers<[1], [0], [0], [1], [0, 0, 1, 1], [], []>} : vector<8x8xbf16>, vector<8x8xbf16>, vector<8x8xf32> -> vector<8x8xf32>
    %185 = arith.truncf %184 : vector<8x8xf32> to vector<8x8xbf16>
    %c3_133 = arith.constant 3 : index
    %c0_134 = arith.constant 0 : index
    %c0_135 = arith.constant 0 : index
    %186 = vector.load %arg10[%c3_133, %c0_134, %c0_135] : memref<4x8x32xbf16, #tpu.memory_space<vmem>>, vector<1x8x32xbf16>
    %187 = vector.shape_cast %186 : vector<1x8x32xbf16> to vector<8x32xbf16>
    %cst_136 = arith.constant dense<0.000000e+00> : vector<8x32xf32>
    %188 = tpu.matmul %185, %187, %cst_136 {dimension_numbers = #tpu.dot_dimension_numbers<[1], [0], [0], [1], [0, 0, 1, 1], [], []>} : vector<8x8xbf16>, vector<8x32xbf16>, vector<8x32xf32> -> vector<8x32xf32>
    %189 = arith.addf %144, %188 : vector<8x32xf32>
    %c0_137 = arith.constant 0 : index
    %c0_138 = arith.constant 0 : index
    %190 = vector.load %arg11[%c0_137, %c0_138] : memref<1x32xf32, #tpu.memory_space<vmem>>, vector<1x32xf32>
    %191 = vector.broadcast %190 : vector<1x32xf32> to vector<8x32xf32>
    %192 = arith.addf %189, %191 : vector<8x32xf32>
    %c0_139 = arith.constant 0 : index
    %c0_140 = arith.constant 0 : index
    %c0_141 = arith.constant 0 : index
    %193 = vector.load %arg12[%c0_139, %c0_140, %c0_141] : memref<1x8x32xf32, #tpu.memory_space<vmem>>, vector<1x8x32xf32>
    %194 = vector.shape_cast %193 : vector<1x8x32xf32> to vector<8x32xf32>
    %195 = vector.shape_cast %192 : vector<8x32xf32> to vector<1x8x32xf32>
    tpu.vector_store %arg12[%c0_139, %c0_140, %c0_141], %195 {strides = array<i32>} : memref<1x8x32xf32, #tpu.memory_space<vmem>>, vector<1x8x32xf32>,
    return
  }
  func.func @transform_0(%arg0: i32) -> (i32, i32, i32) {
    %c0_i32 = arith.constant 0 : i32
    %c0_i32_0 = arith.constant 0 : i32
    %c0_i32_1 = arith.constant 0 : i32
    return %arg0, %c0_i32, %c0_i32_0 : i32, i32, i32
  }
  func.func @transform_1(%arg0: i32) -> (i32, i32, i32) {
    %c0_i32 = arith.constant 0 : i32
    %c0_i32_0 = arith.constant 0 : i32
    %c0_i32_1 = arith.constant 0 : i32
    return %arg0, %c0_i32, %c0_i32_0 : i32, i32, i32
  }
  func.func @transform_2(%arg0: i32) -> (i32, i32, i32) {
    %c0_i32 = arith.constant 0 : i32
    %c0_i32_0 = arith.constant 0 : i32
    %c0_i32_1 = arith.constant 0 : i32
    return %arg0, %c0_i32, %c0_i32_0 : i32, i32, i32
  }
  func.func @transform_3(%arg0: i32) -> (i32, i32, i32) {
    %c0_i32 = arith.constant 0 : i32
    %c0_i32_0 = arith.constant 0 : i32
    %c0_i32_1 = arith.constant 0 : i32
    %c0_i32_2 = arith.constant 0 : i32
    return %c0_i32, %c0_i32_0, %c0_i32_1 : i32, i32, i32
  }
  func.func @transform_4(%arg0: i32) -> (i32, i32, i32) {
    %c0_i32 = arith.constant 0 : i32
    %c0_i32_0 = arith.constant 0 : i32
    %c0_i32_1 = arith.constant 0 : i32
    %c0_i32_2 = arith.constant 0 : i32
    return %c0_i32, %c0_i32_0, %c0_i32_1 : i32, i32, i32
  }
  func.func @transform_5(%arg0: i32) -> (i32, i32, i32) {
    %c0_i32 = arith.constant 0 : i32
    %c0_i32_0 = arith.constant 0 : i32
    %c0_i32_1 = arith.constant 0 : i32
    %c0_i32_2 = arith.constant 0 : i32
    return %c0_i32, %c0_i32_0, %c0_i32_1 : i32, i32, i32
  }
  func.func @transform_6(%arg0: i32) -> (i32, i32, i32) {
    %c0_i32 = arith.constant 0 : i32
    %c0_i32_0 = arith.constant 0 : i32
    %c0_i32_1 = arith.constant 0 : i32
    %c0_i32_2 = arith.constant 0 : i32
    return %c0_i32, %c0_i32_0, %c0_i32_1 : i32, i32, i32
  }
  func.func @transform_7(%arg0: i32) -> (i32, i32, i32) {
    %c0_i32 = arith.constant 0 : i32
    %c0_i32_0 = arith.constant 0 : i32
    %c0_i32_1 = arith.constant 0 : i32
    %c0_i32_2 = arith.constant 0 : i32
    return %c0_i32, %c0_i32_0, %c0_i32_1 : i32, i32, i32
  }
  func.func @transform_8(%arg0: i32) -> (i32, i32, i32) {
    %c0_i32 = arith.constant 0 : i32
    %c0_i32_0 = arith.constant 0 : i32
    %c0_i32_1 = arith.constant 0 : i32
    %c0_i32_2 = arith.constant 0 : i32
    return %c0_i32, %c0_i32_0, %c0_i32_1 : i32, i32, i32
  }
  func.func @transform_9(%arg0: i32) -> (i32, i32, i32) {
    %c0_i32 = arith.constant 0 : i32
    %c0_i32_0 = arith.constant 0 : i32
    %c0_i32_1 = arith.constant 0 : i32
    %c0_i32_2 = arith.constant 0 : i32
    return %c0_i32, %c0_i32_0, %c0_i32_1 : i32, i32, i32
  }
  func.func @transform_10(%arg0: i32) -> (i32, i32) {
    %c0_i32 = arith.constant 0 : i32
    %c0_i32_0 = arith.constant 0 : i32
    %c0_i32_1 = arith.constant 0 : i32
    return %c0_i32, %c0_i32_0 : i32, i32
  }
  func.func @transform_11(%arg0: i32) -> (i32, i32, i32) {
    %c0_i32 = arith.constant 0 : i32
    %c0_i32_0 = arith.constant 0 : i32
    %c0_i32_1 = arith.constant 0 : i32
    return %arg0, %c0_i32, %c0_i32_0 : i32, i32, i32
  }
  func.func @transform_12(%arg0: i32) -> (i32, i32, i32, i32) {
    %c0_i32 = arith.constant 0 : i32
    %c0_i32_0 = arith.constant 0 : i32
    %c0_i32_1 = arith.constant 0 : i32
    %c0_i32_2 = arith.constant 0 : i32
    return %arg0, %c0_i32, %c0_i32_0, %c0_i32_1 : i32, i32, i32, i32
  }
}

</mosaic_0001>

<bundles_post_ra>
// kernel: tpu_custom_call.1
= control target key start
LH: loop header
LB: loop body
LE: loop exit
PB: predicated region body
PF: predicated region fallthrough
CT: control target
= control target key end

     0   :  { %s3087_s0 = inlined_call_operand.vmem [shape: f32[2,8,32], index: 0, kind: input, shape index: {}]   ;;  %s3088_s1 = inlined_call_operand.vmem [shape: f32[2,8,32], index: 1, kind: input, shape index: {}]   ;;  %s3089_s2 = inlined_call_operand.vmem [shape: f32[2,8,32], index: 2, kind: input, shape index: {}]   ;;  %s3090_s3 = inlined_call_operand.vmem [shape: bf16[4,32,8], index: 3, kind: input, shape index: {}]   ;;  %s3091_s4 = inlined_call_operand.vmem [shape: bf16[4,32,8], index: 4, kind: input, shape index: {}]   ;;  %s3092_s5 = inlined_call_operand.vmem [shape: bf16[4,32,8], index: 5, kind: input, shape index: {}]   ;;  %s3093_s6 = inlined_call_operand.vmem [shape: f32[4,1,8], index: 6, kind: input, shape index: {}]   ;;  %s3094_s7 = inlined_call_operand.vmem [shape: f32[4,1,8], index: 7, kind: input, shape index: {}]   ;;  %s3095_s8 = inlined_call_operand.vmem [shape: f32[4,1,8], index: 8, kind: input, shape index: {}]   ;;  %s3096_s9 = inlined_call_operand.vmem [shape: bf16[4,8,32], index: 9, kind: input, shape index: {}]   ;;  %s3097_s10 = inlined_call_operand.vmem [shape: f32[1,32], index: 10, kind: input, shape index: {}]   ;;  %s3098_s11 = inlined_call_operand.hbm [shape: f32[2,8,32], index: 11, kind: output, shape index: {0}]   ;;  %s3099_s12 = inlined_call_operand.hbm [shape: bf16[2,4,8,8], index: 12, kind: output, shape index: {1}]  }
   0x1   :  { %3100 = sst [smem:[#allocation8_spill]] %s3087_s0 }
   0x2   :  { %3101 = sst [smem:[#allocation9_spill]] %s3088_s1 }
   0x3   :  { %3102 = sst [smem:[#allocation10_spill]] %s3089_s2 }
   0x4   :  { %3103 = sst [smem:[#allocation11_spill]] %s3090_s3 }
   0x5   :  { %3104 = sst [smem:[#allocation12_spill]] %s3091_s4 }
   0x6   :  { %3105 = sst [smem:[#allocation13_spill]] %s3092_s5 }
   0x7   :  { %18 = vsyncpa [#allocation3], 0 }
   0x8   :  { %20 = vsyncpa [#allocation3 + $0x1], 0 }
   0x9   :  { %21 = vsyncpa [#allocation5], 0 }
   0xa   :  { %23 = vsyncpa [#allocation5 + $0x1], 0  ;;  %s2647_s21 = smov 0   ;;  %s2649_s22 = smov 0  }
   0xb   :  { %s2651_s23 = smov 0   ;;  %s2653_s24 = smov 0  }
   0xc LB: > { %s2668_s25 = sadd.s32 4294967295, %s2574_s24   ;;  %s2039_s26 = sadd.s32 4294967294, %s2574_s24   ;;  %s2574_s24 = sphi %s2653_s24, %s3118_s24   ;;  %s2570_s23 = sphi %s2651_s23, %s3117_s23   ;;  %s2566_s22 = sphi %s2649_s22, %s3116_s22   ;;  %s2562_s21 = sphi %s2647_s21, %s3115_s21  }
   0xd   : > { %s2672_s27 = sadd.s32 1, %s2574_s24   ;;  %s282_s28 = sadd.s32 1, %s2570_s23 }
   0xe   : > { %s279_s29 = ssub.s32 %s2574_s24, %s2672_s27  ;;  %p292_p0 = scmp.ne.s32.totalorder %s2570_s23, %s2566_s22 }
   0xf   : > { %p280_p1 = scmp.eq.s32.totalorder %s279_s29, 0  ;;  %p293_p2 = scmp.eq.s32.totalorder %s2668_s25, 1 }
  0x10   : > { %p298_p3 = scmp.ne.s32.totalorder %s2566_s22, %s2562_s21  ;;  %p299_p4 = scmp.eq.s32.totalorder %s2039_s26, 1 }
  0x11   : > { %s2683_s30 = scalar_select %p280_p1, %s2570_s23, %s282_s28  }
  0x12   : > { %p2685_p5 = por %p293_p2, %p292_p0  ;;  %p2689_p6 = por %p299_p4, %p298_p3 }
  0x13   : > { %p2042_p7 = scmp.ge.s32.totalorder %s2574_s24, 1  ;;  %p388_p8 = scmp.lt.s32.totalorder %s2574_s24, 3 }
  0x15   : > { %p389_p9 = pnand %p2042_p7, %p388_p8 }
  0x16   : > { %s3108_s4 = sld [smem:[#allocation12_spill]] (!%p389_p9)  ;;  %p442_p10 = scmp.lt.s32.totalorder (!%p389_p9), %s2668_s25, 1 }
  0x17   : > { %392 = sbr.rel (%p389_p9) target bundleno = 3697 (0xe71), region = 64  ;;  %s3109_s3 = sld [smem:[#allocation11_spill]] (!%p389_p9) }
  0x18   : > { %s3110_s1 = sld [smem:[#allocation9_spill]] (!%p389_p9)  ;;  %s2167_s19 = sshll.u32 (!%p389_p9), %s2668_s25, 8 }
  0x19   : > { %s3111_s0 = sld [smem:[#allocation8_spill]] (!%p389_p9) }
  0x1a   : > { %s3112_s5 = sld [smem:[#allocation13_spill]] (!%p389_p9) }
  0x1b   : > { %s3113_s2 = sld [smem:[#allocation10_spill]] (!%p389_p9) }
  0x1c   : > { %v2444_v0 = vld [vmem:[%s3108_s4 + $0x8] sm:$0xff]   ;;  %v2576_v1 = vmov 0.0   ;;  %v2446_v3 = vld [vmem:[%s3108_s4] sm:$0xff]   ;;  %vm2577_vm0 = vmmov 0   ;;  %s443_s29 = scalar_select %p442_p10, %s2668_s25, 1  ;;  %vm484_vm1 = vcmask 261120  }
  0x1d   : > { %2236 = vmatprep.subr.bf16.mxu1 %v2576_v1  ;;  %2228 = vmatprep.subr.bf16.mxu0 %v2576_v1  ;;  %v2445_v2 = vld [vmem:[%s3109_s3 + $0x8] sm:$0xff]   ;;  %v2447_v4 = vld [vmem:[%s3109_s3] sm:$0xff]   ;;  %vm662_vm2 = vcmask 64512   ;;  %vm727_vm3 = vcmask 1043456   ;;  %v2451_v46 = vld [vmem:[%s3109_s3 + $0x18] sm:$0xff]   ;;  %vm721_vm4 = vcmask 60416  }
  0x1e   : > { %2237 = vmatpush3.bf16.msra.mxu1 %v2444_v0  ;;  %2240 = vmatprep.mubr.msk.bf16.mxu1 %vm2577_vm0, %v2576_v1  ;;  %s2717_s15 = sshll.u32 %s443_s29, 3  ;;  %v2052_v9 = vld [vmem:[%s3094_s7] ss:$0 sm:$0xff]  ;;  %v2453_v47 = vld [vmem:[%s3109_s3 + $0x10] sm:$0xff]   ;;  %v2450_v51 = vld [vmem:[%s3108_s4 + $0x18] sm:$0xff]  }
  0x1f   : > { %2229 = vmatpush3.bf16.msra.mxu0 %v2445_v2  ;;  %2238 = vmatprep.subr.bf16.mxu1 %v2576_v1  ;;  %s449_s18 = scalar_lea.vmem %s3110_s1, %s2717_s15  ;;  %s445_s26 = scalar_lea.vmem %s3111_s0, %s2717_s15  ;;  %v2048_v13 = vld [vmem:[%s3093_s6] ss:$0 sm:$0xff]  ;;  %v2452_v53 = vld [vmem:[%s3108_s4 + $0x10] sm:$0xff]   ;;  %v2076_v62 = vld [vmem:[%s3094_s7 + $0x1] ss:$0 sm:$0xff] }
  0x20   : > { %2230 = vmatprep.subr.bf16.mxu0 %v2576_v1  ;;  %2232 = vmatprep.mubr.msk.bf16.mxu0 %vm2577_vm0, %v2576_v1  ;;  %v457_v5 = vld [vmem:[%s449_s18] sm:$0xff]  ;;  %v2448_v24 = vld [vmem:[%s3112_s5 + $0x8] sm:$0xff]   ;;  %s2578_s0 = smov [#allocation4]  }
  0x21   : > { %v455_v6 = vld [vmem:[%s445_s26] sm:$0xff]  ;;  %v2729_v7 = vpack.c.bf16 %v457_v5, %v457_v5  ;;  %s453_s28 = scalar_lea.vmem %s3113_s2, %s2717_s15  ;;  %s2488_s1 = sshll.u32 %s2578_s0, 4  ;;  %s2489_s1 = int_to_ptr.vmem [resolvable:$false] %s2488_s1 }
  0x22   : > { %2239 = vmatpush3.bf16.msra.mxu1 %v2446_v3  ;;  %v2731_v8 = vpack.c.bf16 %v455_v6, %v455_v6  ;;  %v2449_v25 = vld [vmem:[%s3112_s5] sm:$0xff]  }
  0x23   : > { %2231 = vmatpush3.bf16.msra.mxu0 %v2447_v4  ;;  %2252 = vmatprep.subr.bf16.mxu1 %v2576_v1  ;;  %v459_v26 = vld [vmem:[%s453_s28] sm:$0xff]  ;;  %s2790_s28 = sand.u32 1, %s2566_s22  }
  0x24   : > { %2244 = vmatprep.subr.bf16.mxu0 %v2576_v1  ;;  %v2763_v27 = vpack.c.bf16 %v459_v26, %v459_v26  ;;  %v2056_v38 = vld [vmem:[%s3095_s8] ss:$0 sm:$0xff]  ;;  %s2044_s29 = sshll.u32 %s2790_s28, 4  ;;  %v2067_v2 = vld [vmem:[%s3093_s6 + $0x1] ss:$0 sm:$0xff] }
  0x25   : > { %2241 = vmatmul.mubr.msk.bf16.vlgmr.msra.gmra.mxu1 %vm484_vm1, %v2729_v7  ;;  %s2797_s17 = scalar_lea.vmem [#allocation4], %s2044_s29  ;;  %s3010_s29 = scalar_lea.hbm %s3099_s12, %s2167_s19 }
  0x26   : > { %2233 = vmatmul.mubr.msk.bf16.vlgmr.msra.gmra.mxu0 %vm484_vm1, %v2731_v8  ;;  %2254 = vmatprep.mubr.msk.bf16.mxu1 %vm2577_vm0, %v2576_v1  ;;  %s1921_s18 = sshll.u32 %s2797_s17, 4  ;;  %s3005_s18 = int_to_ptr.vmem [resolvable:$true] %s1921_s18 }
  0x27   : > { %2248 = vmatprep.mubr.msk.bf16.mxu0 %vm2577_vm0, %v2576_v1  ;;  %2245 = vmatpush3.bf16.msra.mxu0 %v2448_v24  ;;  %s2484_s15 = scalar_lea.vmem %s3005_s18, 256  ;;  %p2491_p0 = scmp.lt.s32.totalorder %s3005_s18, %s2489_s1 }
  0x28   : > { %2246 = vmatprep.subr.bf16.mxu0 %v2576_v1  ;;  %p2485_p11 = scmp.ne.s32.totalorder %s3005_s18, %s2484_s15 }
  0x2a   : > { %p2486_p12 = pnand %p2485_p11, %p2685_p5 }
  0x2b   : > { %2247 = vmatpush3.bf16.msra.mxu0 %v2449_v25 }
  0x2c   : > { %2258 = vmatprep.subr.bf16.mxu0 %v2576_v1  ;;  %p2487_p13 = pneg %p2486_p12 }
  0x2e   : > { %2249 = vmatmul.mubr.msk.bf16.vlgmr.msra.gmra.mxu0 %vm484_vm1, %v2763_v27 }
  0x2f   : > { %2260 = vmatprep.mubr.msk.bf16.mxu0 %vm2577_vm0, %v2576_v1 }
  0xe5   : > { %v588_v10 = vpop.f32.mrf.mxu1 }
  0xe6   : > { %v522_v11 = vpop.f32.mrf.mxu0  ;;  %v589_v12 = vadd.f32 %v2052_v9, %v588_v10 }
  0xe7   : > { %v2242_v14 = vpop.f32.mrf.mxu1  ;;  %v523_v20 = vadd.f32 %v2048_v13, %v522_v11  ;;  %v2455_v13 = vld [vmem:[%s3112_s5 + $0x10] sm:$0xff]  }
  0xe8   : > { %v2234_v15 = vpop.f32.mrf.mxu0  ;;  %v661_v16 = vpack.c.bf16 %v589_v12, %v589_v12  ;;  %v2454_v12 = vld [vmem:[%s3112_s5 + $0x18] sm:$0xff]  }
  0xe9   : > { %v591_v17 = vpop.f32.mrf.mxu1  ;;  %v660_v23 = vpack.c.bf16 %v523_v20, %v523_v20 }
  0xea   : > { %v525_v18 = vpop.f32.mrf.mxu0  ;;  %v667_v19 = vsel %vm662_vm2, %v661_v16, 0 }
  0xeb   : > { %v2243_v21 = vpop.f32.mrf.mxu1  ;;  %2253 = vmatpush3.bf16.xpose.msra.mxu1 %v667_v19  ;;  %v2085_v19 = vld [vmem:[%s3095_s8 + $0x1] ss:$0 sm:$0xff] }
  0xec   : > { %v2235_v22 = vpop.f32.mrf.mxu0  ;;  %2264 = vmatprep.subr.bf16.mxu1 %v2576_v1 }
  0xee   : > { %v654_v39 = vpop.f32.mrf.mxu0 }
  0xef   : > { %v655_v40 = vadd.f32 %v2056_v38, %v654_v39 }
  0xf0   : > { %v2250_v41 = vpop.f32.mrf.mxu0 }
  0xf1   : > { %v723_v42 = vpack.c.bf16 %v655_v40, %v655_v40  ;;  %v2456_v41 = vld [vmem:[%s3108_s4 + $0x28] sm:$0xff]  }
  0xf2   : > { %2255 = vmatmul.mubr.msk.bf16.vlgmr.msra.gmra.mxu1 %vm662_vm2, %v660_v23  ;;  %v657_v43 = vpop.f32.mrf.mxu0 }
  0xf3   : > { %2268 = vmatprep.mubr.msk.bf16.mxu1 %vm2577_vm0, %v2576_v1  ;;  %v729_v44 = vsel %vm727_vm3, %v723_v42, 0  ;;  %2265 = vmatpush3.bf16.msra.mxu1 %v2451_v46  ;;  %v2457_v43 = vld [vmem:[%s3108_s4 + $0x20] sm:$0xff]  }
  0xf4   : > { %v2251_v45 = vpop.f32.mrf.mxu0  ;;  %2259 = vmatpush3.bf16.msra.mxu0 %v729_v44  ;;  %2266 = vmatprep.subr.bf16.mxu1 %v2576_v1 }
  0xf5   : > { %2272 = vmatprep.subr.bf16.mxu0 %v2576_v1  ;;  %v2458_v45 = vld [vmem:[%s3109_s3 + $0x28] sm:$0xff]  }
  0xf7   : > { %2267 = vmatpush3.bf16.msra.mxu1 %v2453_v47 }
  0xf8   : > { %2280 = vmatprep.subr.bf16.mxu1 %v2576_v1 }
  0xfa   : > { %2269 = vmatmul.mubr.msk.bf16.vlgmr.msra.gmra.mxu1 %vm484_vm1, %v2731_v8 }
  0xfb   : > { %2284 = vmatprep.mubr.msk.bf16.mxu1 %vm2577_vm0, %v2576_v1  ;;  %2281 = vmatpush3.bf16.msra.mxu1 %v2454_v12 }
  0xfc   : > { %2282 = vmatprep.subr.bf16.mxu1 %v2576_v1 }
  0xff   : > { %2283 = vmatpush3.bf16.msra.mxu1 %v2455_v13  ;;  %v2460_v13 = vld [vmem:[%s3112_s5 + $0x28] sm:$0xff]  }
 0x100   : > { %2294 = vmatprep.subr.bf16.mxu1 %v2576_v1 }
 0x102   : > { %2285 = vmatmul.mubr.msk.bf16.vlgmr.msra.gmra.mxu1 %vm484_vm1, %v2763_v27 }
 0x103   : > { %2296 = vmatprep.mubr.msk.bf16.mxu1 %vm2577_vm0, %v2576_v1 }
 0x1b2   : > { %v703_v28 = vpop.f32.mrf.mxu1 }
 0x1b3   : > { %v709_v29 = vsel %vm662_vm2, %v703_v28, -inf }
 0x1b4   : > { %710 = vmax.xlane.f32.xlu0 %v709_v29  ;;  %v2256_v30 = vpop.f32.mrf.mxu1 }
 0x1b6   : > { %v706_v31 = vpop.f32.mrf.mxu1 }
 0x1b8   : > { %v2257_v32 = vpop.f32.mrf.mxu1 }
 0x1ba   : > { %v832_v54 = vpop.f32.mrf.mxu1 }
 0x1bb   : > { %v833_v9 = vadd.f32 %v2067_v2, %v832_v54 }
 0x1bc   : > { %v2270_v55 = vpop.f32.mrf.mxu1 }
 0x1bd   : > { %v968_v11 = vpack.c.bf16 %v833_v9, %v833_v9  ;;  %v2109_v55 = vld [vmem:[%s3094_s7 + $0x2] ss:$0 sm:$0xff] }
 0x1be   : > { %v835_v56 = vpop.f32.mrf.mxu1 }
 0x1c0   : > { %v2271_v57 = vpop.f32.mrf.mxu1 }
 0x1c2   : > { %v962_v20 = vpop.f32.mrf.mxu1 }
 0x1c3   : > { %v963_v21 = vadd.f32 %v2085_v19, %v962_v20 }
 0x1c4   : > { %v2286_v22 = vpop.f32.mrf.mxu1 }
 0x1c5   : > { %v1030_v23 = vpack.c.bf16 %v963_v21, %v963_v21 }
 0x1c6   : > { %v965_v24 = vpop.f32.mrf.mxu1 }
 0x1c7   : > { %v1035_v25 = vsel %vm727_vm3, %v1030_v23, 0 }
 0x1c8   : > { %v2287_v26 = vpop.f32.mrf.mxu1  ;;  %2295 = vmatpush3.bf16.msra.mxu1 %v1035_v25  ;;  %v2118_v25 = vld [vmem:[%s3095_s8 + $0x2] ss:$0 sm:$0xff] }
 0x1c9   : > { %2306 = vmatprep.subr.bf16.mxu1 %v2576_v1 }
 0x23d   : > { %v711_v33 = vpop.xlane.xlu0 %710 }
 0x23e   : > { %v712_v34 = vsub.f32 %v703_v28, %v711_v33  ;;  %v2092_v33 = vld [vmem:[%s3096_s9 + $0x4] sm:$0xf] }
 0x240   : > { %v713_v35 = vmul.f32 1.442695, %v712_v34  ;;  %v1084_v34 = vsel %vm727_vm3, %v2092_v33, 0 }
 0x242   : > { %2468 = vpow2.f32 %v713_v35 }
 0x24f   : > { %v2469_v36 = vpop.eup %2468 }
 0x250   : > { %v715_v37 = vsel %vm662_vm2, %v2469_v36, 0.0 }
 0x251   : > { %716 = vadd.xlane.f32.xlu0 %v715_v37  ;;  %v772_v37 = vld [vmem:[%s3096_s9] sm:$0xf] }
 0x252   : > { %v1130_v40 = vsel %vm727_vm3, %v772_v37, 0 }
 0x2da   : > { %v717_v48 = vpop.xlane.xlu0 %716 }
 0x2db   : > { %2470 = vrcp.f32 %v717_v48 }
 0x2e8   : > { %v2471_v49 = vpop.eup %2470 }
 0x2e9   : > { %v719_v50 = vmul.f32 %v2471_v49, %v2469_v36  ;;  %v2459_v49 = vld [vmem:[%s3109_s3 + $0x20] sm:$0xff]  }
 0x2eb   : > { %v720_v52 = vpack.c.bf16 %v719_v50, %v719_v50 }
 0x2ed   : > { %2261 = vmatmul.mubr.msk.bf16.vlgmr.msra.gmra.mxu0 %vm662_vm2, %v720_v52  ;;  %722 = vst.msk [vmem:[%s2797_s17] sm:$0xf] %vm721_vm4, %v720_v52 }
 0x2ee   : > { %2273 = vmatpush3.bf16.msra.mxu0 %v2450_v51  ;;  %2276 = vmatprep.mubr.msk.bf16.mxu0 %vm2577_vm0, %v2576_v1 }
 0x2ef   : > { %2274 = vmatprep.subr.bf16.mxu0 %v2576_v1 }
 0x2f2   : > { %2275 = vmatpush3.bf16.msra.mxu0 %v2452_v53 }
 0x2f3   : > { %2288 = vmatprep.subr.bf16.mxu0 %v2576_v1 }
 0x2f5   : > { %2277 = vmatmul.mubr.msk.bf16.vlgmr.msra.gmra.mxu0 %vm484_vm1, %v2729_v7 }
 0x2f6   : > { %2290 = vmatprep.mubr.msk.bf16.mxu0 %vm2577_vm0, %v2576_v1 }
 0x3ad   : > { %v2812_v58 = vpop.f32.mrf.mxu0 }
 0x3ae   : > { %v771_v42 = vpack.c.bf16 %v2812_v58, %v2812_v58 }
 0x3af   : > { %v2262_v59 = vpop.f32.mrf.mxu0 }
 0x3b1   : > { %v768_v60 = vpop.f32.mrf.mxu0 }
 0x3b3   : > { %v2263_v61 = vpop.f32.mrf.mxu0 }
 0x3b5   : > { %v897_v63 = vpop.f32.mrf.mxu0 }
 0x3b6   : > { %v898_v0 = vadd.f32 %v2076_v62, %v897_v63 }
 0x3b7   : > { %v2278_v3 = vpop.f32.mrf.mxu0 }
 0x3b8   : > { %v969_v4 = vpack.c.bf16 %v898_v0, %v898_v0 }
 0x3b9   : > { %v900_v5 = vpop.f32.mrf.mxu0 }
 0x3ba   : > { %v974_v6 = vsel %vm662_vm2, %v969_v4, 0  ;;  %v2100_v4 = vld [vmem:[%s3093_s6 + $0x2] ss:$0 sm:$0xff] }
 0x3bb   : > { %v2279_v10 = vpop.f32.mrf.mxu0  ;;  %2289 = vmatpush3.bf16.xpose.msra.mxu0 %v974_v6 }
 0x3bc   : > { %2300 = vmatprep.subr.bf16.mxu0 %v2576_v1 }
 0x3c2   : > { %2291 = vmatmul.mubr.msk.bf16.vlgmr.msra.gmra.mxu0 %vm662_vm2, %v968_v11 }
 0x3c3   : > { %2302 = vmatprep.mubr.msk.bf16.mxu0 %vm2577_vm0, %v2576_v1  ;;  %2301 = vmatpush3.bf16.msra.mxu0 %v1084_v34  ;;  %v2125_v34 = vld [vmem:[%s3096_s9 + $0x8] sm:$0xf] }
 0x3c4   : > { %2312 = vmatprep.subr.bf16.mxu0 %v2576_v1 }
 0x482   : > { %v1010_v14 = vpop.f32.mrf.mxu0 }
 0x483   : > { %v1016_v15 = vsel %vm662_vm2, %v1010_v14, -inf }
 0x484   : > { %1017 = vmax.xlane.f32.xlu1 %v1016_v15  ;;  %v2292_v16 = vpop.f32.mrf.mxu0 }
 0x486   : > { %v1013_v17 = vpop.f32.mrf.mxu0 }
 0x488   : > { %v2293_v18 = vpop.f32.mrf.mxu0 }
 0x50d   : > { %v1018_v28 = vpop.xlane.xlu1 %1017 }
 0x50e   : > { %v1019_v29 = vsub.f32 %v1010_v14, %v1018_v28  ;;  %v2461_v14 = vld [vmem:[%s3112_s5 + $0x20] sm:$0xff]  }
 0x510   : > { %v1020_v30 = vmul.f32 1.442695, %v1019_v29 }
 0x512   : > { %2472 = vpow2.f32 %v1020_v30 }
 0x51f   : > { %v2473_v31 = vpop.eup %2472 }
 0x520   : > { %v1022_v32 = vsel %vm662_vm2, %v2473_v31, 0.0 }
 0x521   : > { %1023 = vadd.xlane.f32.xlu1 %v1022_v32 }
 0x5aa   : > { %v1024_v35 = vpop.xlane.xlu1 %1023 }
 0x5ab   : > { %2474 = vrcp.f32 %v1024_v35  ;;  %v1483_v35 = vsel %vm727_vm3, %v2125_v34, 0 }
 0x5b8   : > { %v2475_v36 = vpop.eup %2474 }
 0x5b9   : > { %v1026_v38 = vmul.f32 %v2475_v36, %v2473_v31 }
 0x5bb   : > { %v1027_v39 = vpack.c.bf16 %v1026_v38, %v1026_v38 }
 0x5bd   : > { %2297 = vmatmul.mubr.msk.bf16.vlgmr.msra.gmra.mxu1 %vm662_vm2, %v1027_v39  ;;  %2090 = vst.msk [vmem:[%s2797_s17 + $0x4] sm:$0xf] %vm721_vm4, %v1027_v39 }
 0x5be   : > { %2307 = vmatpush3.bf16.msra.mxu1 %v1130_v40  ;;  %2308 = vmatprep.mubr.msk.bf16.mxu1 %vm2577_vm0, %v2576_v1  ;;  %v2463_v40 = vld [vmem:[%s3109_s3 + $0x38] sm:$0xff]  }
 0x5bf   : > { %2320 = vmatprep.subr.bf16.mxu1 %v2576_v1 }
 0x5c5   : > { %2309 = vmatmul.mubr.msk.bf16.vlgmr.msra.gmra.mxu1 %vm662_vm2, %v771_v42 }
 0x5c6   : > { %2321 = vmatpush3.bf16.msra.mxu1 %v2456_v41  ;;  %2324 = vmatprep.mubr.msk.bf16.mxu1 %vm2577_vm0, %v2576_v1  ;;  %v2465_v41 = vld [vmem:[%s3109_s3 + $0x30] sm:$0xff]  }
 0x5c7   : > { %2322 = vmatprep.subr.bf16.mxu1 %v2576_v1 }
 0x5ca   : > { %2323 = vmatpush3.bf16.msra.mxu1 %v2457_v43  ;;  %v2462_v43 = vld [vmem:[%s3108_s4 + $0x38] sm:$0xff]  }
 0x5cb   : > { %2336 = vmatprep.subr.bf16.mxu1 %v2576_v1 }
 0x5cd   : > { %2325 = vmatmul.mubr.msk.bf16.vlgmr.msra.gmra.mxu1 %vm484_vm1, %v2729_v7 }
 0x5ce   : > { %2338 = vmatprep.mubr.msk.bf16.mxu1 %vm2577_vm0, %v2576_v1 }
 0x67d   : > { %v1071_v44 = vpop.f32.mrf.mxu1 }
 0x67e   : > { %v1077_v46 = vpack.c.bf16 %v1071_v44, %v1071_v44 }
 0x67f   : > { %v2298_v47 = vpop.f32.mrf.mxu1 }
 0x680   : > { %2303 = vmatmul.mubr.msk.bf16.vlgmr.msra.gmra.mxu0 %vm662_vm2, %v1077_v46  ;;  %v2464_v47 = vld [vmem:[%s3108_s4 + $0x30] sm:$0xff]  }
 0x681   : > { %v1074_v48 = vpop.f32.mrf.mxu1  ;;  %2313 = vmatpush3.bf16.msra.mxu0 %v2458_v45  ;;  %2316 = vmatprep.mubr.msk.bf16.mxu0 %vm2577_vm0, %v2576_v1 }
 0x682   : > { %2314 = vmatprep.subr.bf16.mxu0 %v2576_v1 }
 0x683   : > { %v2299_v50 = vpop.f32.mrf.mxu1 }
 0x685   : > { %v2886_v51 = vpop.f32.mrf.mxu1  ;;  %2315 = vmatpush3.bf16.msra.mxu0 %v2459_v49 }
 0x686   : > { %2328 = vmatprep.subr.bf16.mxu0 %v2576_v1 }
 0x687   : > { %v2310_v52 = vpop.f32.mrf.mxu1 }
 0x688   : > { %2317 = vmatmul.mubr.msk.bf16.vlgmr.msra.gmra.mxu0 %vm484_vm1, %v2731_v8 }
 0x689   : > { %v1169_v53 = vpop.f32.mrf.mxu1  ;;  %2332 = vmatprep.mubr.msk.bf16.mxu0 %vm2577_vm0, %v2576_v1  ;;  %2329 = vmatpush3.bf16.msra.mxu0 %v2460_v13 }
 0x68a   : > { %2330 = vmatprep.subr.bf16.mxu0 %v2576_v1 }
 0x68b   : > { %v2311_v54 = vpop.f32.mrf.mxu1 }
 0x68d   : > { %v1296_v56 = vpop.f32.mrf.mxu1  ;;  %2331 = vmatpush3.bf16.msra.mxu0 %v2461_v14 }
 0x68e   : > { %v1297_v57 = vadd.f32 %v2109_v55, %v1296_v56  ;;  %2342 = vmatprep.subr.bf16.mxu0 %v2576_v1 }
 0x68f   : > { %v2326_v58 = vpop.f32.mrf.mxu1 }
 0x690   : > { %v1368_v59 = vpack.c.bf16 %v1297_v57, %v1297_v57  ;;  %2333 = vmatmul.mubr.msk.bf16.vlgmr.msra.gmra.mxu0 %vm484_vm1, %v2763_v27 }
 0x691   : > { %v1299_v60 = vpop.f32.mrf.mxu1  ;;  %2344 = vmatprep.mubr.msk.bf16.mxu0 %vm2577_vm0, %v2576_v1 }
 0x692   : > { %v1373_v61 = vsel %vm662_vm2, %v1368_v59, 0 }
 0x693   : > { %v2327_v62 = vpop.f32.mrf.mxu1  ;;  %2337 = vmatpush3.bf16.xpose.msra.mxu1 %v1373_v61 }
 0x694   : > { %2348 = vmatprep.subr.bf16.mxu1 %v2576_v1  ;;  %v2132_v62 = vld [vmem:[%s3093_s6 + $0x3] ss:$0 sm:$0xff] }
 0x740   : > { %v2898_v63 = vpop.f32.mrf.mxu0 }
 0x741   : > { %v1167_v53 = vadd.f32 %v2886_v51, %v2898_v63 }
 0x742   : > { %v2304_v0 = vpop.f32.mrf.mxu0 }
 0x744   : > { %v1123_v2 = vpop.f32.mrf.mxu0 }
 0x746   : > { %v2305_v3 = vpop.f32.mrf.mxu0 }
 0x748   : > { %v1231_v5 = vpop.f32.mrf.mxu0 }
 0x749   : > { %v1232_v6 = vadd.f32 %v2100_v4, %v1231_v5  ;;  %v2466_v5 = vld [vmem:[%s3112_s5 + $0x38] sm:$0xff]  }
 0x74a   : > { %v2318_v9 = vpop.f32.mrf.mxu0 }
 0x74b   : > { %v1367_v10 = vpack.c.bf16 %v1232_v6, %v1232_v6  ;;  %v2467_v6 = vld [vmem:[%s3112_s5 + $0x30] sm:$0xff]  }
 0x74c   : > { %v1234_v11 = vpop.f32.mrf.mxu0 }
 0x74d   : > { %2339 = vmatmul.mubr.msk.bf16.vlgmr.msra.gmra.mxu1 %vm662_vm2, %v1367_v10 }
 0x74e   : > { %v2319_v12 = vpop.f32.mrf.mxu0  ;;  %2350 = vmatprep.mubr.msk.bf16.mxu1 %vm2577_vm0, %v2576_v1  ;;  %2349 = vmatpush3.bf16.msra.mxu1 %v1483_v35 }
 0x74f   : > { %2362 = vmatprep.subr.bf16.mxu1 %v2576_v1 }
 0x750   : > { %v1361_v26 = vpop.f32.mrf.mxu0 }
 0x751   : > { %v1362_v28 = vadd.f32 %v2118_v25, %v1361_v26  ;;  %v2157_v25 = vld [vmem:[%s3096_s9 + $0xc] sm:$0xf] }
 0x752   : > { %v2334_v29 = vpop.f32.mrf.mxu0  ;;  %v1837_v26 = vsel %vm727_vm3, %v2157_v25, 0 }
 0x753   : > { %v1429_v30 = vpack.c.bf16 %v1362_v28, %v1362_v28 }
 0x754   : > { %v1364_v31 = vpop.f32.mrf.mxu0 }
 0x755   : > { %v1434_v32 = vsel %vm727_vm3, %v1429_v30, 0 }
 0x756   : > { %v2335_v33 = vpop.f32.mrf.mxu0  ;;  %2343 = vmatpush3.bf16.msra.mxu0 %v1434_v32 }
 0x757   : > { %2354 = vmatprep.subr.bf16.mxu0 %v2576_v1 }
 0x80d   : > { %v1409_v15 = vpop.f32.mrf.mxu1 }
 0x80e   : > { %v1415_v16 = vsel %vm662_vm2, %v1409_v15, -inf }
 0x80f   : > { %1416 = vmax.xlane.f32.xlu0 %v1415_v16  ;;  %v2340_v17 = vpop.f32.mrf.mxu1 }
 0x811   : > { %v1412_v18 = vpop.f32.mrf.mxu1 }
 0x813   : > { %v2341_v19 = vpop.f32.mrf.mxu1 }
 0x898   : > { %v1417_v20 = vpop.xlane.xlu0 %1416 }
 0x899   : > { %v1418_v21 = vsub.f32 %v1409_v15, %v1417_v20 }
 0x89b   : > { %v1419_v22 = vmul.f32 1.442695, %v1418_v21 }
 0x89d   : > { %2476 = vpow2.f32 %v1419_v22 }
 0x8aa   : > { %v2477_v23 = vpop.eup %2476 }
 0x8ab   : > { %v1421_v24 = vsel %vm662_vm2, %v2477_v23, 0.0 }
 0x8ac   : > { %1422 = vadd.xlane.f32.xlu1 %v1421_v24 }
 0x935   : > { %v1423_v36 = vpop.xlane.xlu1 %1422 }
 0x936   : > { %2478 = vrcp.f32 %v1423_v36 }
 0x943   : > { %v2479_v37 = vpop.eup %2478 }
 0x944   : > { %v1425_v38 = vmul.f32 %v2479_v37, %v2477_v23 }
 0x946   : > { %v1426_v39 = vpack.c.bf16 %v1425_v38, %v1425_v38 }
 0x948   : > { %2345 = vmatmul.mubr.msk.bf16.vlgmr.msra.gmra.mxu0 %vm662_vm2, %v1426_v39  ;;  %2123 = vst.msk [vmem:[%s2797_s17 + $0x8] sm:$0xf] %vm721_vm4, %v1426_v39 }
 0x949   : > { %2358 = vmatprep.mubr.msk.bf16.mxu0 %vm2577_vm0, %v2576_v1  ;;  %2355 = vmatpush3.bf16.msra.mxu0 %v2463_v40 }
 0x94a   : > { %2356 = vmatprep.subr.bf16.mxu0 %v2576_v1 }
 0x94d   : > { %2357 = vmatpush3.bf16.msra.mxu0 %v2465_v41 }
 0x94e   : > { %2370 = vmatprep.subr.bf16.mxu0 %v2576_v1 }
 0x950   : > { %2359 = vmatmul.mubr.msk.bf16.vlgmr.msra.gmra.mxu0 %vm484_vm1, %v2731_v8 }
 0x951   : > { %2374 = vmatprep.mubr.msk.bf16.mxu0 %vm2577_vm0, %v2576_v1  ;;  %2371 = vmatpush3.bf16.msra.mxu0 %v2466_v5 }
 0x952   : > { %2372 = vmatprep.subr.bf16.mxu0 %v2576_v1 }
 0x955   : > { %2373 = vmatpush3.bf16.msra.mxu0 %v2467_v6 }
 0x956   : > { %2384 = vmatprep.subr.bf16.mxu0 %v2576_v1 }
 0x958   : > { %2375 = vmatmul.mubr.msk.bf16.vlgmr.msra.gmra.mxu0 %vm484_vm1, %v2763_v27  ;;  %v2150_v27 = vld [vmem:[%s3095_s8 + $0x3] ss:$0 sm:$0xff] }
 0x959   : > { %2386 = vmatprep.mubr.msk.bf16.mxu0 %vm2577_vm0, %v2576_v1 }
 0xa08   : > { %v1470_v42 = vpop.f32.mrf.mxu0 }
 0xa09   : > { %v1476_v44 = vpack.c.bf16 %v1470_v42, %v1470_v42 }
 0xa0a   : > { %v2346_v45 = vpop.f32.mrf.mxu0 }
 0xa0b   : > { %2351 = vmatmul.mubr.msk.bf16.vlgmr.msra.gmra.mxu1 %vm662_vm2, %v1476_v44 }
 0xa0c   : > { %v1473_v46 = vpop.f32.mrf.mxu0  ;;  %2363 = vmatpush3.bf16.msra.mxu1 %v2462_v43  ;;  %2366 = vmatprep.mubr.msk.bf16.mxu1 %vm2577_vm0, %v2576_v1 }
 0xa0d   : > { %2364 = vmatprep.subr.bf16.mxu1 %v2576_v1 }
 0xa0e   : > { %v2347_v8 = vpop.f32.mrf.mxu0 }
 0xa10   : > { %2365 = vmatpush3.bf16.msra.mxu1 %v2464_v47  ;;  %v1585_v48 = vpop.f32.mrf.mxu0 }
 0xa11   : > { %2378 = vmatprep.subr.bf16.mxu1 %v2576_v1  ;;  %v1586_v63 = vadd.f32 %v2132_v62, %v1585_v48 }
 0xa12   : > { %v2360_v49 = vpop.f32.mrf.mxu0 }
 0xa13   : > { %2367 = vmatmul.mubr.msk.bf16.vlgmr.msra.gmra.mxu1 %vm484_vm1, %v2729_v7  ;;  %v2141_v7 = vld [vmem:[%s3094_s7 + $0x3] ss:$0 sm:$0xff]  ;;  %v1721_v4 = vpack.c.bf16 %v1586_v63, %v1586_v63 }
 0xa14   : > { %2380 = vmatprep.mubr.msk.bf16.mxu1 %vm2577_vm0, %v2576_v1  ;;  %v1588_v50 = vpop.f32.mrf.mxu0 }
 0xa16   : > { %v2361_v52 = vpop.f32.mrf.mxu0 }
 0xacb   : > { %v1519_v54 = vpop.f32.mrf.mxu1 }
 0xacc   : > { %v2964_v55 = vadd.f32 %v1519_v54, %v1167_v53 }
 0xacd   : > { %v2352_v56 = vpop.f32.mrf.mxu1 }
 0xacf   : > { %v1522_v57 = vpop.f32.mrf.mxu1 }
 0xad1   : > { %v2353_v58 = vpop.f32.mrf.mxu1 }
 0xad3   : > { %v1650_v59 = vpop.f32.mrf.mxu1 }
 0xad4   : > { %v1651_v60 = vadd.f32 %v2141_v7, %v1650_v59 }
 0xad5   : > { %v2368_v61 = vpop.f32.mrf.mxu1 }
 0xad6   : > { %v1722_v0 = vpack.c.bf16 %v1651_v60, %v1651_v60 }
 0xad7   : > { %v1653_v2 = vpop.f32.mrf.mxu1 }
 0xad8   : > { %v1727_v51 = vsel %vm662_vm2, %v1722_v0, 0 }
 0xad9   : > { %v2369_v3 = vpop.f32.mrf.mxu1  ;;  %2379 = vmatpush3.bf16.xpose.msra.mxu1 %v1727_v51 }
 0xada   : > { %2390 = vmatprep.subr.bf16.mxu1 %v2576_v1 }
 0xae0   : > { %2381 = vmatmul.mubr.msk.bf16.vlgmr.msra.gmra.mxu1 %vm662_vm2, %v1721_v4 }
 0xae1   : > { %2392 = vmatprep.mubr.msk.bf16.mxu1 %vm2577_vm0, %v2576_v1  ;;  %v1715_v1 = vpop.f32.mrf.mxu0  ;;  %2391 = vmatpush3.bf16.msra.mxu1 %v1837_v26 }
 0xae2   : > { %v1716_v19 = vadd.f32 %v2150_v27, %v1715_v1 }
 0xae3   : > { %v2376_v20 = vpop.f32.mrf.mxu0 }
 0xae4   : > { %v1783_v21 = vpack.c.bf16 %v1716_v19, %v1716_v19 }
 0xae5   : > { %v1718_v22 = vpop.f32.mrf.mxu0 }
 0xae6   : > { %v1788_v23 = vsel %vm727_vm3, %v1783_v21, 0 }
 0xae7   : > { %v2377_v24 = vpop.f32.mrf.mxu0  ;;  %2385 = vmatpush3.bf16.msra.mxu0 %v1788_v23 }
 0xba0   : > { %v1763_v9 = vpop.f32.mrf.mxu1 }
 0xba1   : > { %v1769_v10 = vsel %vm662_vm2, %v1763_v9, -inf }
 0xba2   : > { %1770 = vmax.xlane.f32.xlu0 %v1769_v10  ;;  %v2382_v11 = vpop.f32.mrf.mxu1 }
 0xba4   : > { %v1766_v12 = vpop.f32.mrf.mxu1 }
 0xba6   : > { %v2383_v13 = vpop.f32.mrf.mxu1 }
 0xc2b   : > { %v1771_v14 = vpop.xlane.xlu0 %1770 }
 0xc2c   : > { %v1772_v15 = vsub.f32 %v1763_v9, %v1771_v14 }
 0xc2e   : > { %v1773_v16 = vmul.f32 1.442695, %v1772_v15 }
 0xc30   : > { %2480 = vpow2.f32 %v1773_v16 }
 0xc3d   : > { %v2481_v17 = vpop.eup %2480 }
 0xc3e   : > { %v1775_v18 = vsel %vm662_vm2, %v2481_v17, 0.0 }
 0xc3f   : > { %1776 = vadd.xlane.f32.xlu1 %v1775_v18 }
 0xcc8   : > { %v1777_v28 = vpop.xlane.xlu1 %1776 }
 0xcc9   : > { %2482 = vrcp.f32 %v1777_v28 }
 0xcd6   : > { %v2483_v29 = vpop.eup %2482 }
 0xcd7   : > { %v1779_v30 = vmul.f32 %v2483_v29, %v2481_v17 }
 0xcd9   : > { %v1780_v31 = vpack.c.bf16 %v1779_v30, %v1779_v30 }
 0xcdb   : > { %2387 = vmatmul.mubr.msk.bf16.vlgmr.msra.gmra.mxu0 %vm662_vm2, %v1780_v31  ;;  %2155 = vst.msk [vmem:[%s2797_s17 + $0xc] sm:$0xf] %vm721_vm4, %v1780_v31  ;;  %s2490_s17 = scalar_lea.vmem %s2489_s1, 512 }
 0xcdc   : > { %p2492_p1 = scmp.lt.s32.totalorder %s2490_s17, %s2484_s15 }
 0xcde   : > { %p2493_p2 = por %p2492_p1, %p2491_p0 }
 0xce0   : > { %p2494_p3 = pnand %p2493_p2, %p2487_p13 }
 0xd9b   : > { %v1824_v32 = vpop.f32.mrf.mxu0 }
 0xd9c   : > { %v1830_v33 = vpack.c.bf16 %v1824_v32, %v1824_v32 }
 0xd9d   : > { %v2388_v34 = vpop.f32.mrf.mxu0 }
 0xd9e   : > { %2393 = vmatmul.mubr.msk.bf16.vlgmr.msra.gmra.mxu1 %vm662_vm2, %v1830_v33 }
 0xd9f   : > { %v1827_v35 = vpop.f32.mrf.mxu0 }
 0xda1   : > { %v2389_v36 = vpop.f32.mrf.mxu0 }
 0xda2   : > { %2497 = shalt.err (!%p2494_p3)
}
 0xda3   : > { %s2498_s19 = scalar_lea.hbm %s3010_s29, 256  ;;  %s2502_s0 = scalar_lea.hbm %s3099_s12, 512 }
 0xda4   : > { %p2499_p4 = scmp.ne.s32.totalorder %s3010_s29, %s2498_s19  ;;  %p2503_p9 = scmp.lt.s32.totalorder %s3010_s29, %s3099_s12 }
 0xda5   : > { %p2504_p10 = scmp.lt.s32.totalorder %s2502_s0, %s2498_s19 }
 0xda6   : > { %p2500_p7 = pnand %p2499_p4, %p2685_p5 }
 0xda7   : > { %p2505_p11 = por %p2504_p10, %p2503_p9 }
 0xda8   : > { %p2501_p8 = pneg %p2500_p7 }
 0xdaa   : > { %p2506_p12 = pnand %p2505_p11, %p2501_p8 }
 0xdac   : > { %2509 = shalt.err (!%p2506_p12)
}
 0xdad   : > { %s2579_s1 = smov 64   ;;  %s2580_s15 = smov 4   ;;  %v2159_v38 = vld [vmem:[%s3097_s10] ss:$0 sm:$0xff] }
 0xdae   : > { %s3114_s17 = scalar_lea.sflag [#allocation5], %s2790_s28  ;;  %s2043_s20 = sshll.u32 %s2790_s28, 3 }
 0xdaf   : > { %2397 = dma.vmem_to_hbm [thread:$0]  (%p2685_p5), %s3005_s18, 256, %s3010_s29, %s3114_s17, %s2579_s1, %s2579_s1, %s2580_s15  }
 0xdb0   : > { %s2162_s19 = sshll.u32 %s2668_s25, 7  ;;  %s434_s26 = scalar_lea.vmem [#allocation2], %s2043_s20 }
 0xdb1   : > { %s1908_s0 = sshll.u32 %s434_s26, 4  ;;  %s3044_s5 = scalar_lea.hbm %s3098_s11, %s2162_s19  ;;  %s3046_s0 = int_to_ptr.vmem [resolvable:$true] %s1908_s0 }
 0xdb2   : > { %s1890_s25 = scalar_lea.sflag [#allocation3], %s2790_s28  ;;  %s2510_s18 = scalar_lea.vmem %s3046_s0, 128 }
 0xdb3   : > { %p2511_p13 = scmp.ne.s32.totalorder %s3046_s0, %s2510_s18  ;;  %s2581_s29 = smov [#allocation2]  }
 0xdb4   : > { %s2514_s1 = sshll.u32 %s2581_s29, 4  ;;  %s2515_s1 = int_to_ptr.vmem [resolvable:$false] %s2514_s1 }
 0xdb5   : > { %p2512_p0 = pnand %p2511_p13, %p2685_p5  ;;  %s2516_s3 = scalar_lea.vmem %s2515_s1, 256 }
 0xdb6   : > { %p2517_p2 = scmp.lt.s32.totalorder %s3046_s0, %s2515_s1  ;;  %p2518_p3 = scmp.lt.s32.totalorder %s2516_s3, %s2510_s18 }
 0xdb7   : > { %p2513_p1 = pneg %p2512_p0 }
 0xdb8   : > { %p2519_p4 = por %p2518_p3, %p2517_p2 }
 0xdba   : > { %p2520_p7 = pnand %p2519_p4, %p2513_p1 }
 0xe5e   : > { %v1873_v37 = vpop.f32.mrf.mxu1 }
 0xe5f   : > { %v1879_v39 = vadd.f32 %v1873_v37, %v2964_v55 }
 0xe60   : > { %v2394_v40 = vpop.f32.mrf.mxu1 }
 0xe61   : > { %v1887_v41 = vadd.f32 %v2159_v38, %v1879_v39 }
 0xe62   : > { %v1876_v42 = vpop.f32.mrf.mxu1 }
 0xe63   : > { %1888 = vst.msk [vmem:[%s434_s26] sm:$0xff] %vm484_vm1, %v1887_v41 }
 0xe64   : > { %v2395_v43 = vpop.f32.mrf.mxu1 }
 0xe65   : > { %2523 = shalt.err (!%p2520_p7)
}
 0xe66   : > { %s2524_s4 = scalar_lea.hbm %s3044_s5, 128  ;;  %s2528_s17 = scalar_lea.hbm %s3098_s11, 256 }
 0xe67   : > { %p2525_p8 = scmp.ne.s32.totalorder %s3044_s5, %s2524_s4  ;;  %p2529_p11 = scmp.lt.s32.totalorder %s3044_s5, %s3098_s11 }
 0xe68   : > { %p2530_p12 = scmp.lt.s32.totalorder %s2528_s17, %s2524_s4 }
 0xe69   : > { %p2526_p9 = pnand %p2525_p8, %p2685_p5 }
 0xe6a   : > { %p2531_p13 = por %p2530_p12, %p2529_p11 }
 0xe6b   : > { %p2527_p10 = pneg %p2526_p9 }
 0xe6d   : > { %p2532_p0 = pnand %p2531_p13, %p2527_p10 }
 0xe6f   : > { %2535 = shalt.err (!%p2532_p0)
}
 0xe70   : > { %2396 = dma.vmem_to_hbm [thread:$0]  (%p2685_p5), %s3046_s0, 128, %s3044_s5, %s1890_s25  }
 0xe71 PF: > { %p2407_p1 = scmp.ge.s32.totalorder %s2574_s24, 2  ;;  %s1936_s16 = sand.u32 1, %s2562_s21  }
 0xe72   : > { %s1937_s19 = scalar_lea.sflag [#allocation3], %s1936_s16 }
 0xe73   : > { %p2401_p2 = pnand %p2407_p1, %p2689_p6 }
 0xe75   : > { %p2402_p3 = pneg %p2401_p2 }
 0xe77   : > { %2553 = dma.done.wait (%p2402_p3), %s1937_s19, 128  }
 0xe78   : > { %2555 = vsyncadd (%p2402_p3), %s1937_s19, 4294967168  ;;  %s1946_s26 = scalar_lea.sflag [#allocation5], %s1936_s16 }
 0xe79   : > { %2557 = dma.done.wait (%p2402_p3), %s1946_s26, 256  }
 0xe7a   : > { %2559 = vsyncadd (%p2402_p3), %s1946_s26, 4294967040  ;;  %p26_p5 = scmp.ge.s32.totalorder %s2672_s27, 4   ;;  %s3115_s21 = smov %s2566_s22 }
 0xe7b   : > { %s3116_s22 = smov %s2570_s23  ;;  %s3117_s23 = smov %s2683_s30 }
 0xe7c   : > { %s3118_s24 = smov %s2672_s27  ;;  %28 = sbr.rel (!%p26_p5) target bundleno = 12 (0xc), region = 146 }
 0xe81   :  { %1951 = vsyncpa [#allocation3], 1 }
 0xe82   :  { %1953 = vsyncpa [#allocation3 + $0x1], 1 }
 0xe83   :  { %1954 = vsyncpa [#allocation5], 1 }
 0xe84   :  { %1956 = vsyncpa [#allocation5 + $0x1], 1 }

</bundles_post_ra>
